<compile_context>
chip_gen: v7x
topology: tpu7x:2x2x1
jax: 0.10.0
libtpu: 0.0.40
codegen_flags: <defaults>
</compile_context>

<pallas_src>
import numpy as np
import jax
import jax.numpy as jnp
from jax.experimental import pallas as pl
from jax.experimental.pallas import tpu as pltpu


def deconv_prelu_kernel(x_ref, w_ref, b_ref, alpha_ref, o_ref, patch_ref):
    # x_ref:     (H, W, Cin)        one image, channels-last (UNpadded)
    # w_ref:     (9*Cin, 4*Cout)    fused 3x3-tap x 4-phase weight matrix
    # b_ref:     (1, 4*Cout)        bias, tiled over the 4 phases
    # alpha_ref: (1, 1) in SMEM     PReLU slope
    # o_ref:     (H, W, 4*Cout)     lane-dense output (phases along channels)
    # patch_ref: (H, W, 9*Cin)      VMEM im2col scratch
    H, W, Cin = x_ref.shape
    C4 = o_ref.shape[-1]
    HW = H * W

    # Zero the scratch once per step: untouched border strips are the halo.
    patch_ref[...] = jnp.zeros_like(patch_ref)

    x = x_ref[...]  # hoisted: single full load, sliced 9x below
    k = 0
    for a in range(3):            # vertical tap offset in the padded frame
        for b in range(3):        # horizontal tap offset
            # destination rows/cols of shifted slice that land inside image
            si0, si1 = max(0, 1 - a), min(H, H + 1 - a)
            sj0, sj1 = max(0, 1 - b), min(W, W + 1 - b)
            xi0, xi1 = si0 + a - 1, si1 + a - 1
            xj0, xj1 = sj0 + b - 1, sj1 + b - 1
            patch_ref[si0:si1, sj0:sj1, k * Cin:(k + 1) * Cin] = (
                x[xi0:xi1, xj0:xj1, :])
            k += 1

    # Single fused MXU call: (HW, 9*Cin) @ (9*Cin, 4*Cout), f32 accumulate.
    acc = jnp.dot(patch_ref[...].reshape(HW, 9 * Cin), w_ref[...],
                  preferred_element_type=jnp.float32)
    acc = acc + b_ref[...]
    alpha = alpha_ref[0, 0]
    out = jnp.where(acc >= 0.0, acc, alpha * acc)        # fused PReLU
    o_ref[...] = out.reshape(H, W, C4).astype(o_ref.dtype)


def deconv_block_forward(x_nchw, weight, bias, alpha):
    """ConvTranspose2d(Cin, Cout, 4, 2, 1) + PReLU.

    x_nchw: (N, Cin, H, W), weight: (Cin, Cout, 4, 4) [PyTorch layout],
    bias: (Cout,), alpha: scalar PReLU slope.  Returns (N, Cout, 2H, 2W).
    """
    N, Cin, H, W = x_nchw.shape
    Cout = weight.shape[1]
    C4 = 4 * Cout

    # NCHW -> NHWC so channels map to TPU lanes (no HBM pad pass anymore).
    x_nhwc = jnp.transpose(x_nchw, (0, 2, 3, 1)).astype(jnp.float32)

    # Fused weight:  Wf[(3a+b)*Cin + ci, (2r+c)*Cout + co]
    #   = weight[ci, co, 3 + r - 2a, 3 + c - 2b]  if (a-r) and (b-c) in {0,1}
    #   = 0 otherwise   (tap (a,b) of the 3x3 window unused by phase (r,c)).
    w = weight.astype(jnp.float32)
    zero = jnp.zeros((Cin, Cout), jnp.float32)
    rows = []
    for a in range(3):
        for b in range(3):
            cols = []
            for r in range(2):
                for c in range(2):
                    if 0 <= a - r <= 1 and 0 <= b - c <= 1:
                        cols.append(w[:, :, 3 + r - 2 * a, 3 + c - 2 * b])
                    else:
                        cols.append(zero)
            rows.append(jnp.concatenate(cols, axis=1))    # (Cin, 4*Cout)
    Wf = jnp.concatenate(rows, axis=0)                    # (9*Cin, 4*Cout)

    bias4 = jnp.tile(bias.astype(jnp.float32), 4).reshape(1, C4)
    alpha2d = jnp.full((1, 1), alpha, dtype=jnp.float32)

    out = pl.pallas_call(
        deconv_prelu_kernel,
        out_shape=jax.ShapeDtypeStruct((N, H, W, C4), jnp.float32),
        grid=(N,),
        in_specs=[
            pl.BlockSpec((None, H, W, Cin), lambda n: (n, 0, 0, 0)),
            pl.BlockSpec((9 * Cin, C4), lambda n: (0, 0)),
            pl.BlockSpec((1, C4), lambda n: (0, 0)),
            pl.BlockSpec(memory_space=pltpu.SMEM),
        ],
        out_specs=pl.BlockSpec((None, H, W, C4), lambda n: (n, 0, 0, 0)),
        scratch_shapes=[pltpu.VMEM((H, W, 9 * Cin), jnp.float32)],
        compiler_params=pltpu.CompilerParams(
            dimension_semantics=("parallel",)),
    )(x_nhwc, Wf, bias4, alpha2d)

    # Depth-to-space (pixel shuffle) + NHWC -> NCHW, fused on the XLA side:
    # (N,H,W,4*Cout) -> (N,H,W,2,2,Cout) -> (N,2H,2W,Cout) -> (N,Cout,2H,2W)
    out = out.reshape(N, H, W, 2, 2, Cout)
    out = jnp.transpose(out, (0, 1, 3, 2, 4, 5)).reshape(N, 2 * H, 2 * W, Cout)
    return jnp.transpose(out, (0, 3, 1, 2))


def reference_forward(x_nchw, weight, bias, alpha):
    """Independent NumPy reference via the scatter definition of ConvTranspose2d."""
    x = np.asarray(x_nchw, np.float64)
    w = np.asarray(weight, np.float64)
    b = np.asarray(bias, np.float64)
    N, Cin, H, W = x.shape
    Cout = w.shape[1]
    y_full = np.zeros((N, Cout, 2 * H + 2, 2 * W + 2), np.float64)
    for kh in range(4):
        for kw in range(4):
            contrib = np.einsum('nihw,io->nohw', x, w[:, :, kh, kw])
            y_full[:, :, kh:kh + 2 * H:2, kw:kw + 2 * W:2] += contrib
    y = y_full[:, :, 1:1 + 2 * H, 1:1 + 2 * W] + b[None, :, None, None]
    return np.where(y >= 0, y, alpha * y)


if __name__ == "__main__":
    N, Cin, Cout, H, W = 2, 4, 8, 16, 16
    key = jax.random.PRNGKey(0)
    kx, kw, kb = jax.random.split(key, 3)

    x = jax.random.normal(kx, (N, Cin, H, W), dtype=jnp.float32)

    # Deterministic "PyTorch-like" init: uniform(-k, k), k = 1/sqrt(Cin*4*4).
    fan = Cin * 4 * 4
    k = 1.0 / np.sqrt(fan)
    weight = jax.random.uniform(kw, (Cin, Cout, 4, 4), jnp.float32, -k, k)
    bias = jax.random.uniform(kb, (Cout,), jnp.float32, -k, k)
    alpha = 0.25  # PReLU default init

    y = deconv_block_forward(x, weight, bias, alpha)
    y = jax.block_until_ready(y)

    y_ref = reference_forward(np.asarray(x), np.asarray(weight),
                              np.asarray(bias), alpha)

    assert y.shape == (N, Cout, 2 * H, 2 * W), y.shape
    np.testing.assert_allclose(np.asarray(y), y_ref, rtol=1e-4, atol=1e-5)
    print("KERNEL_OK")
</pallas_src>

<mosaic_0001>
module attributes {stable_mosaic.version = 11 : i64} {
  func.func @deconv_prelu_kernel(%arg0: i32, %arg1: memref<1x16x16x4xf32, #tpu.memory_space<vmem>>, %arg2: memref<36x32xf32, #tpu.memory_space<vmem>>, %arg3: memref<1x32xf32, #tpu.memory_space<vmem>>, %arg4: memref<1x1xf32, #tpu.memory_space<smem>>, %arg5: memref<1x16x16x32xf32, #tpu.memory_space<vmem>>, %arg6: memref<16x16x36xf32, #tpu.memory_space<vmem>>) attributes {dimension_semantics = [#tpu.dimension_semantics<parallel>], iteration_bounds = array<i64: 2>, scalar_prefetch = 0 : i64, scratch_operands = 1 : i64, tpu.core_type = #tpu.core_type<tc>, window_params = [{transform_indices = @transform_0, window_bounds = array<i64: 1, 16, 16, 4>}, {pipeline_mode = #tpu.pipeline_mode<synchronous>, transform_indices = @transform_1, window_bounds = array<i64: 36, 32>}, {pipeline_mode = #tpu.pipeline_mode<synchronous>, transform_indices = @transform_2, window_bounds = array<i64: 1, 32>}, {transform_indices = @transform_3, window_bounds = array<i64: 1, 1>}, {transform_indices = @transform_4, window_bounds = array<i64: 1, 16, 16, 32>}]} {
    %cst = arith.constant 0.000000e+00 : f32
    %0 = vector.broadcast %cst : f32 to vector<16x16x36xf32>
    %c0 = arith.constant 0 : index
    %c0_0 = arith.constant 0 : index
    %c0_1 = arith.constant 0 : index
    %1 = vector.load %arg6[%c0, %c0_0, %c0_1] : memref<16x16x36xf32, #tpu.memory_space<vmem>>, vector<16x16x36xf32>
    tpu.vector_store %arg6[%c0, %c0_0, %c0_1], %0 {strides = array<i32>} : memref<16x16x36xf32, #tpu.memory_space<vmem>>, vector<16x16x36xf32>,
    %c0_2 = arith.constant 0 : index
    %c0_3 = arith.constant 0 : index
    %c0_4 = arith.constant 0 : index
    %c0_5 = arith.constant 0 : index
    %2 = vector.load %arg1[%c0_2, %c0_3, %c0_4, %c0_5] : memref<1x16x16x4xf32, #tpu.memory_space<vmem>>, vector<1x16x16x4xf32>
    %3 = vector.shape_cast %2 : vector<1x16x16x4xf32> to vector<16x16x4xf32>
    %4 = vector.extract_strided_slice %3 {offsets = [0, 0, 0], sizes = [15, 15, 4], strides = [1, 1, 1]} : vector<16x16x4xf32> to vector<15x15x4xf32>
    %c1 = arith.constant 1 : index
    %c1_6 = arith.constant 1 : index
    %c0_7 = arith.constant 0 : index
    %5 = vector.load %arg6[%c1, %c1_6, %c0_7] : memref<16x16x36xf32, #tpu.memory_space<vmem>>, vector<15x15x4xf32>
    tpu.vector_store %arg6[%c1, %c1_6, %c0_7], %4 {strides = array<i32>} : memref<16x16x36xf32, #tpu.memory_space<vmem>>, vector<15x15x4xf32>,
    %6 = vector.extract_strided_slice %3 {offsets = [0, 0, 0], sizes = [15, 16, 4], strides = [1, 1, 1]} : vector<16x16x4xf32> to vector<15x16x4xf32>
    %c1_8 = arith.constant 1 : index
    %c0_9 = arith.constant 0 : index
    %c4 = arith.constant 4 : index
    %7 = vector.load %arg6[%c1_8, %c0_9, %c4] : memref<16x16x36xf32, #tpu.memory_space<vmem>>, vector<15x16x4xf32>
    tpu.vector_store %arg6[%c1_8, %c0_9, %c4], %6 {strides = array<i32>} : memref<16x16x36xf32, #tpu.memory_space<vmem>>, vector<15x16x4xf32>,
    %8 = vector.extract_strided_slice %3 {offsets = [0, 1, 0], sizes = [15, 15, 4], strides = [1, 1, 1]} : vector<16x16x4xf32> to vector<15x15x4xf32>
    %c1_10 = arith.constant 1 : index
    %c0_11 = arith.constant 0 : index
    %c8 = arith.constant 8 : index
    %9 = vector.load %arg6[%c1_10, %c0_11, %c8] : memref<16x16x36xf32, #tpu.memory_space<vmem>>, vector<15x15x4xf32>
    tpu.vector_store %arg6[%c1_10, %c0_11, %c8], %8 {strides = array<i32>} : memref<16x16x36xf32, #tpu.memory_space<vmem>>, vector<15x15x4xf32>,
    %10 = vector.extract_strided_slice %3 {offsets = [0, 0, 0], sizes = [16, 15, 4], strides = [1, 1, 1]} : vector<16x16x4xf32> to vector<16x15x4xf32>
    %c0_12 = arith.constant 0 : index
    %c1_13 = arith.constant 1 : index
    %c12 = arith.constant 12 : index
    %11 = vector.load %arg6[%c0_12, %c1_13, %c12] : memref<16x16x36xf32, #tpu.memory_space<vmem>>, vector<16x15x4xf32>
    tpu.vector_store %arg6[%c0_12, %c1_13, %c12], %10 {strides = array<i32>} : memref<16x16x36xf32, #tpu.memory_space<vmem>>, vector<16x15x4xf32>,
    %c0_14 = arith.constant 0 : index
    %c0_15 = arith.constant 0 : index
    %c16 = arith.constant 16 : index
    %12 = vector.load %arg6[%c0_14, %c0_15, %c16] : memref<16x16x36xf32, #tpu.memory_space<vmem>>, vector<16x16x4xf32>
    tpu.vector_store %arg6[%c0_14, %c0_15, %c16], %3 {strides = array<i32>} : memref<16x16x36xf32, #tpu.memory_space<vmem>>, vector<16x16x4xf32>,
    %13 = vector.extract_strided_slice %3 {offsets = [0, 1, 0], sizes = [16, 15, 4], strides = [1, 1, 1]} : vector<16x16x4xf32> to vector<16x15x4xf32>
    %c0_16 = arith.constant 0 : index
    %c0_17 = arith.constant 0 : index
    %c20 = arith.constant 20 : index
    %14 = vector.load %arg6[%c0_16, %c0_17, %c20] : memref<16x16x36xf32, #tpu.memory_space<vmem>>, vector<16x15x4xf32>
    tpu.vector_store %arg6[%c0_16, %c0_17, %c20], %13 {strides = array<i32>} : memref<16x16x36xf32, #tpu.memory_space<vmem>>, vector<16x15x4xf32>,
    %15 = vector.extract_strided_slice %3 {offsets = [1, 0, 0], sizes = [15, 15, 4], strides = [1, 1, 1]} : vector<16x16x4xf32> to vector<15x15x4xf32>
    %c0_18 = arith.constant 0 : index
    %c1_19 = arith.constant 1 : index
    %c24 = arith.constant 24 : index
    %16 = vector.load %arg6[%c0_18, %c1_19, %c24] : memref<16x16x36xf32, #tpu.memory_space<vmem>>, vector<15x15x4xf32>
    tpu.vector_store %arg6[%c0_18, %c1_19, %c24], %15 {strides = array<i32>} : memref<16x16x36xf32, #tpu.memory_space<vmem>>, vector<15x15x4xf32>,
    %17 = vector.extract_strided_slice %3 {offsets = [1, 0, 0], sizes = [15, 16, 4], strides = [1, 1, 1]} : vector<16x16x4xf32> to vector<15x16x4xf32>
    %c0_20 = arith.constant 0 : index
    %c0_21 = arith.constant 0 : index
    %c28 = arith.constant 28 : index
    %18 = vector.load %arg6[%c0_20, %c0_21, %c28] : memref<16x16x36xf32, #tpu.memory_space<vmem>>, vector<15x16x4xf32>
    tpu.vector_store %arg6[%c0_20, %c0_21, %c28], %17 {strides = array<i32>} : memref<16x16x36xf32, #tpu.memory_space<vmem>>, vector<15x16x4xf32>,
    %19 = vector.extract_strided_slice %3 {offsets = [1, 1, 0], sizes = [15, 15, 4], strides = [1, 1, 1]} : vector<16x16x4xf32> to vector<15x15x4xf32>
    %c0_22 = arith.constant 0 : index
    %c0_23 = arith.constant 0 : index
    %c32 = arith.constant 32 : index
    %20 = vector.load %arg6[%c0_22, %c0_23, %c32] : memref<16x16x36xf32, #tpu.memory_space<vmem>>, vector<15x15x4xf32>
    tpu.vector_store %arg6[%c0_22, %c0_23, %c32], %19 {strides = array<i32>} : memref<16x16x36xf32, #tpu.memory_space<vmem>>, vector<15x15x4xf32>,
    %c0_24 = arith.constant 0 : index
    %c0_25 = arith.constant 0 : index
    %c0_26 = arith.constant 0 : index
    %21 = vector.load %arg6[%c0_24, %c0_25, %c0_26] : memref<16x16x36xf32, #tpu.memory_space<vmem>>, vector<16x16x36xf32>
    %22 = vector.shape_cast %21 : vector<16x16x36xf32> to vector<256x36xf32>
    %c0_27 = arith.constant 0 : index
    %c0_28 = arith.constant 0 : index
    %23 = vector.load %arg2[%c0_27, %c0_28] : memref<36x32xf32, #tpu.memory_space<vmem>>, vector<36x32xf32>
    %cst_29 = arith.constant dense<0.000000e+00> : vector<256x32xf32>
    %24 = tpu.matmul %22, %23, %cst_29 {dimension_numbers = #tpu.dot_dimension_numbers<[1], [0], [0], [1], [0, 0, 1, 1], [], []>} : vector<256x36xf32>, vector<36x32xf32>, vector<256x32xf32> -> vector<256x32xf32>
    %c0_30 = arith.constant 0 : index
    %c0_31 = arith.constant 0 : index
    %25 = vector.load %arg3[%c0_30, %c0_31] : memref<1x32xf32, #tpu.memory_space<vmem>>, vector<1x32xf32>
    %26 = vector.broadcast %25 : vector<1x32xf32> to vector<256x32xf32>
    %27 = arith.addf %24, %26 : vector<256x32xf32>
    %c0_32 = arith.constant 0 : index
    %c0_33 = arith.constant 0 : index
    %28 = memref.load %arg4[%c0_32, %c0_33] : memref<1x1xf32, #tpu.memory_space<smem>>
    %cst_34 = arith.constant 0.000000e+00 : f32
    %29 = vector.broadcast %cst_34 : f32 to vector<256x32xf32>
    %30 = arith.cmpf oge, %27, %29 : vector<256x32xf32>
    %31 = vector.broadcast %28 : f32 to vector<256x32xf32>
    %32 = arith.mulf %31, %27 : vector<256x32xf32>
    %33 = arith.select %30, %27, %32 : vector<256x32xi1>, vector<256x32xf32>
    %34 = vector.shape_cast %33 : vector<256x32xf32> to vector<16x16x32xf32>
    %c0_35 = arith.constant 0 : index
    %c0_36 = arith.constant 0 : index
    %c0_37 = arith.constant 0 : index
    %c0_38 = arith.constant 0 : index
    %35 = vector.load %arg5[%c0_35, %c0_36, %c0_37, %c0_38] : memref<1x16x16x32xf32, #tpu.memory_space<vmem>>, vector<1x16x16x32xf32>
    %36 = vector.shape_cast %35 : vector<1x16x16x32xf32> to vector<16x16x32xf32>
    %37 = vector.shape_cast %34 : vector<16x16x32xf32> to vector<1x16x16x32xf32>
    tpu.vector_store %arg5[%c0_35, %c0_36, %c0_37, %c0_38], %37 {strides = array<i32>} : memref<1x16x16x32xf32, #tpu.memory_space<vmem>>, vector<1x16x16x32xf32>,
    return
  }
  func.func @transform_0(%arg0: i32) -> (i32, i32, i32, i32) {
    %c0_i32 = arith.constant 0 : i32
    %c0_i32_0 = arith.constant 0 : i32
    %c0_i32_1 = arith.constant 0 : i32
    %c0_i32_2 = arith.constant 0 : i32
    return %arg0, %c0_i32, %c0_i32_0, %c0_i32_1 : i32, i32, i32, i32
  }
  func.func @transform_1(%arg0: i32) -> (i32, i32) {
    %c0_i32 = arith.constant 0 : i32
    %c0_i32_0 = arith.constant 0 : i32
    %c0_i32_1 = arith.constant 0 : i32
    return %c0_i32, %c0_i32_0 : i32, i32
  }
  func.func @transform_2(%arg0: i32) -> (i32, i32) {
    %c0_i32 = arith.constant 0 : i32
    %c0_i32_0 = arith.constant 0 : i32
    %c0_i32_1 = arith.constant 0 : i32
    return %c0_i32, %c0_i32_0 : i32, i32
  }
  func.func @transform_3(%arg0: i32) -> (i32, i32) {
    %c0_i32 = arith.constant 0 : i32
    %c0_i32_0 = arith.constant 0 : i32
    %c0_i32_1 = arith.constant 0 : i32
    return %c0_i32, %c0_i32_0 : i32, i32
  }
  func.func @transform_4(%arg0: i32) -> (i32, i32, i32, i32) {
    %c0_i32 = arith.constant 0 : i32
    %c0_i32_0 = arith.constant 0 : i32
    %c0_i32_1 = arith.constant 0 : i32
    %c0_i32_2 = arith.constant 0 : i32
    return %arg0, %c0_i32, %c0_i32_0, %c0_i32_1 : i32, i32, i32, i32
  }
}

</mosaic_0001>

<bundles_post_ra>
// kernel: tpu_custom_call.1
= control target key start
LH: loop header
LB: loop body
LE: loop exit
PB: predicated region body
PF: predicated region fallthrough
CT: control target
= control target key end

     0   :  { %s3432_s0 = inlined_call_operand.vmem [shape: f32[2,16,16,4], index: 0, kind: input, shape index: {}]   ;;  %s3433_s1 = inlined_call_operand.vmem [shape: f32[36,32], index: 1, kind: input, shape index: {}]   ;;  %s3434_s2 = inlined_call_operand.vmem [shape: f32[1,32], index: 2, kind: input, shape index: {}]   ;;  %s3435_s3 = inlined_call_operand.<no memory space> [shape: f32[1,1], index: 3, kind: input, shape index: {}]   ;;  %s3436_s4 = inlined_call_operand.hbm [shape: f32[2,16,16,32], index: 4, kind: output, shape index: {}]  }
   0x1   :  { %9 = sst [smem:[#allocation3]] %s3435_s3 }
   0x2   :  { %10 = vsyncpa [#allocation5], 0 }
   0x3   :  { %12 = vsyncpa [#allocation5 + $0x1], 0  ;;  %s2209_s17 = smov 0   ;;  %s2211_s18 = smov 0  }
   0x4   :  { %s2213_s19 = smov 0   ;;  %s2215_s20 = smov 0  }
   0x5 LB: > { %s2230_s3 = sadd.s32 4294967295, %s2168_s20   ;;  %s1900_s21 = sadd.s32 4294967294, %s2168_s20   ;;  %s2168_s20 = sphi %s2215_s20, %s3442_s20   ;;  %s2164_s19 = sphi %s2213_s19, %s3441_s19   ;;  %s2160_s18 = sphi %s2211_s18, %s3440_s18   ;;  %s2156_s17 = sphi %s2209_s17, %s3439_s17  }
   0x6   : > { %s2234_s22 = sadd.s32 1, %s2168_s20   ;;  %s114_s23 = sadd.s32 1, %s2164_s19 }
   0x7   : > { %s111_s24 = ssub.s32 %s2168_s20, %s2234_s22  ;;  %p124_p0 = scmp.ne.s32.totalorder %s2164_s19, %s2160_s18 }
   0x8   : > { %p112_p1 = scmp.eq.s32.totalorder %s111_s24, 0  ;;  %p125_p2 = scmp.eq.s32.totalorder %s2230_s3, 1 }
   0x9   : > { %p130_p3 = scmp.ne.s32.totalorder %s2160_s18, %s2156_s17  ;;  %p131_p4 = scmp.eq.s32.totalorder %s1900_s21, 1 }
   0xa   : > { %s2245_s25 = scalar_select %p112_p1, %s2164_s19, %s114_s23  }
   0xb   : > { %p2247_p5 = por %p125_p2, %p124_p0  ;;  %p2251_p6 = por %p131_p4, %p130_p3 }
   0xc   : > { %p1903_p7 = scmp.ge.s32.totalorder %s2168_s20, 1  ;;  %p166_p8 = scmp.lt.s32.totalorder %s2168_s20, 3 }
   0xe   : > { %p167_p9 = pnand %p1903_p7, %p166_p8 }
   0xf   : > { %p192_p10 = scmp.lt.s32.totalorder (!%p167_p9), %s2230_s3, 1  ;;  %vm197_vm0 = vcmask (!%p167_p9), 293888   ;;  %v2170_v0 = vmov (!%p167_p9), 0.0   ;;  %vm263_vm1 = vcmask (!%p167_p9), 31744   ;;  %vm265_vm2 = vcmask (!%p167_p9), 30720   ;;  %s2171_s7 = smov (!%p167_p9), 4  }
  0x10   : > { %170 = sbr.rel (%p167_p9) target bundleno = 875 (0x36b), region = 36  ;;  %202 = vst.msk [vmem:[#allocation2 + $0x20] sm:$0xff] (!%p167_p9), %vm197_vm0, %v2170_v0  ;;  %203 = vst.msk [vmem:[#allocation2 + $0x28] sm:$0xff] (!%p167_p9), %vm197_vm0, %v2170_v0  ;;  %s2172_s8 = smov (!%p167_p9), 8   ;;  %vm415_vm3 = vcmask (!%p167_p9), 64544   ;;  %vm538_vm4 = vcmask (!%p167_p9), 97344  }
  0x11   : > { %198 = vst.msk [vmem:[#allocation2] sm:$0xff] (!%p167_p9), %vm197_vm0, %v2170_v0  ;;  %199 = vst.msk [vmem:[#allocation2 + $0x8] sm:$0xff] (!%p167_p9), %vm197_vm0, %v2170_v0  ;;  %s2173_s9 = smov (!%p167_p9), 12   ;;  %s2174_s10 = smov (!%p167_p9), 16   ;;  %vm536_vm5 = vcmask (!%p167_p9), 97345   ;;  %vm1464_vm6 = vcmask (!%p167_p9), 1043456  }
  0x12   : > { %200 = vst.msk [vmem:[#allocation2 + $0x10] sm:$0xff] (!%p167_p9), %vm197_vm0, %v2170_v0  ;;  %201 = vst.msk [vmem:[#allocation2 + $0x18] sm:$0xff] (!%p167_p9), %vm197_vm0, %v2170_v0  ;;  %s2175_s11 = smov (!%p167_p9), 20   ;;  %s2176_s12 = smov (!%p167_p9), 24   ;;  %vm668_vm7 = vcmask (!%p167_p9), 129120   ;;  %vm666_vm8 = vcmask (!%p167_p9), 130144  }
  0x13   : > { %204 = vst.msk [vmem:[#allocation2 + $0x30] sm:$0xff] (!%p167_p9), %vm197_vm0, %v2170_v0  ;;  %205 = vst.msk [vmem:[#allocation2 + $0x38] sm:$0xff] (!%p167_p9), %vm197_vm0, %v2170_v0  ;;  %s2177_s13 = smov (!%p167_p9), 28   ;;  %vm796_vm9 = vcmask (!%p167_p9), 162944   ;;  %vm925_vm10 = vcmask (!%p167_p9), 195745   ;;  %vm927_vm11 = vcmask (!%p167_p9), 195744  }
  0x14   : > { %206 = vst.msk [vmem:[#allocation2 + $0x40] sm:$0xff] (!%p167_p9), %vm197_vm0, %v2170_v0  ;;  %207 = vst.msk [vmem:[#allocation2 + $0x48] sm:$0xff] (!%p167_p9), %vm197_vm0, %v2170_v0  ;;  %vm1049_vm12 = vcmask (!%p167_p9), 228544   ;;  %vm1051_vm13 = vcmask (!%p167_p9), 227520   ;;  %vm1171_vm14 = vcmask (!%p167_p9), 261344   ;;  %vm1292_vm15 = vcmask (!%p167_p9), 294145  }
  0x15   : > { %208 = vst.msk [vmem:[#allocation2 + $0x50] sm:$0xff] (!%p167_p9), %vm197_vm0, %v2170_v0  ;;  %209 = vst.msk [vmem:[#allocation2 + $0x58] sm:$0xff] (!%p167_p9), %vm197_vm0, %v2170_v0  ;;  %s1947_s14 = sshll.u32 (!%p167_p9), %s2230_s3, 12 }
  0x16   : > { %210 = vst.msk [vmem:[#allocation2 + $0x60] sm:$0xff] (!%p167_p9), %vm197_vm0, %v2170_v0  ;;  %211 = vst.msk [vmem:[#allocation2 + $0x68] sm:$0xff] (!%p167_p9), %vm197_vm0, %v2170_v0 }
  0x17   : > { %212 = vst.msk [vmem:[#allocation2 + $0x70] sm:$0xff] %vm197_vm0, %v2170_v0  ;;  %213 = vst.msk [vmem:[#allocation2 + $0x78] sm:$0xff] %vm197_vm0, %v2170_v0  ;;  %s193_s28 = scalar_select %p192_p10, %s2230_s3, 1 }
  0x18   : > { %214 = vst.msk [vmem:[#allocation2 + $0x80] sm:$0xff] %vm197_vm0, %v2170_v0  ;;  %215 = vst.msk [vmem:[#allocation2 + $0x88] sm:$0xff] %vm197_vm0, %v2170_v0  ;;  %s3380_s3 = scalar_lea.hbm %s3436_s4, %s1947_s14 }
  0x19   : > { %216 = vst.msk [vmem:[#allocation2 + $0x90] sm:$0xff] %vm197_vm0, %v2170_v0  ;;  %217 = vst.msk [vmem:[#allocation2 + $0x98] sm:$0xff] %vm197_vm0, %v2170_v0  ;;  %s1946_s29 = sshll.u32 %s193_s28, 8  ;;  %s2179_s28 = smov [#allocation4]  }
  0x1a   : > { %218 = vst.msk [vmem:[#allocation2 + $0xa0] sm:$0xff] %vm197_vm0, %v2170_v0  ;;  %219 = vst.msk [vmem:[#allocation2 + $0xa8] sm:$0xff] %vm197_vm0, %v2170_v0  ;;  %s2296_s6 = scalar_lea.vmem %s3432_s0, %s1946_s29  ;;  %s2110_s29 = sshll.u32 %s2179_s28, 4  ;;  %s2111_s29 = int_to_ptr.vmem [resolvable:$false] %s2110_s29 }
  0x1b   : > { %220 = vst.msk [vmem:[#allocation2 + $0xb0] sm:$0xff] %vm197_vm0, %v2170_v0  ;;  %221 = vst.msk [vmem:[#allocation2 + $0xb8] sm:$0xff] %vm197_vm0, %v2170_v0  ;;  %v2299_v1 = vld [vmem:[%s2296_s6 + $0x10] sm:$0xff]  ;;  %v2302_v2 = vld [vmem:[%s2296_s6] sm:$0xff]  ;;  %s2112_s30 = scalar_lea.vmem %s2111_s29, 8192 }
  0x1c   : > { %222 = vst.msk [vmem:[#allocation2 + $0xc0] sm:$0xff] %vm197_vm0, %v2170_v0  ;;  %223 = vst.msk [vmem:[#allocation2 + $0xc8] sm:$0xff] %vm197_vm0, %v2170_v0  ;;  %v2305_v3 = vld [vmem:[%s2296_s6 + $0x18] sm:$0xff]  ;;  %329 = vrot.lane.b32.xlu1 %v2299_v1, %s2171_s7  ;;  %325 = vrot.lane.b32.xlu0 %v2302_v2, %s2171_s7  ;;  %v2312_v4 = vld [vmem:[%s2296_s6 + $0x8] sm:$0xff] }
  0x1d   : > { %224 = vst.msk [vmem:[#allocation2 + $0xd0] sm:$0xff] %vm197_vm0, %v2170_v0  ;;  %225 = vst.msk [vmem:[#allocation2 + $0xd8] sm:$0xff] %vm197_vm0, %v2170_v0  ;;  %v2315_v5 = vld [vmem:[%s2296_s6 + $0x28] sm:$0xff]  ;;  %v2324_v6 = vld [vmem:[%s2296_s6 + $0x20] sm:$0xff] }
  0x1e   : > { %226 = vst.msk [vmem:[#allocation2 + $0xe0] sm:$0xff] %vm197_vm0, %v2170_v0  ;;  %227 = vst.msk [vmem:[#allocation2 + $0xe8] sm:$0xff] %vm197_vm0, %v2170_v0  ;;  %v2327_v7 = vld [vmem:[%s2296_s6 + $0x38] sm:$0xff]  ;;  %v2330_v8 = vld [vmem:[%s2296_s6 + $0x30] sm:$0xff] }
  0x1f   : > { %228 = vst.msk [vmem:[#allocation2 + $0xf0] sm:$0xff] %vm197_vm0, %v2170_v0  ;;  %229 = vst.msk [vmem:[#allocation2 + $0xf8] sm:$0xff] %vm197_vm0, %v2170_v0  ;;  %v2337_v9 = vld [vmem:[%s2296_s6 + $0x48] sm:$0xff]  ;;  %v2340_v10 = vld [vmem:[%s2296_s6 + $0x40] sm:$0xff] }
  0x20   : > { %267 = vst.msk [vmem:[#allocation2 + $0x21] sm:$0xff] %vm263_vm1, %v2299_v1  ;;  %264 = vst.msk [vmem:[#allocation2 + $0x11] sm:$0xff] %vm263_vm1, %v2302_v2  ;;  %v2343_v11 = vld [vmem:[%s2296_s6 + $0x58] sm:$0xff]  ;;  %v2352_v12 = vld [vmem:[%s2296_s6 + $0x50] sm:$0xff]  ;;  %331 = vrot.lane.b32.xlu1 %v2305_v3, %s2171_s7  ;;  %327 = vrot.lane.b32.xlu0 %v2312_v4, %s2171_s7 }
  0x21   : > { %268 = vst.msk [vmem:[#allocation2 + $0x29] sm:$0x7f] %vm265_vm2, %v2305_v3  ;;  %266 = vst.msk [vmem:[#allocation2 + $0x19] sm:$0x7f] %vm265_vm2, %v2312_v4  ;;  %v2355_v13 = vld [vmem:[%s2296_s6 + $0x68] sm:$0xff]  ;;  %v2358_v14 = vld [vmem:[%s2296_s6 + $0x60] sm:$0xff] }
  0x22   : > { %270 = vst.msk [vmem:[#allocation2 + $0x39] sm:$0x7f] %vm265_vm2, %v2315_v5  ;;  %272 = vst.msk [vmem:[#allocation2 + $0x49] sm:$0x7f] %vm265_vm2, %v2327_v7  ;;  %v2371_v15 = vld [vmem:[%s2296_s6 + $0x78] sm:$0xff]  ;;  %v2374_v16 = vld [vmem:[%s2296_s6 + $0x70] sm:$0xff] }
  0x23   : > { %269 = vst.msk [vmem:[#allocation2 + $0x31] sm:$0xff] %vm263_vm1, %v2324_v6  ;;  %271 = vst.msk [vmem:[#allocation2 + $0x41] sm:$0xff] %vm263_vm1, %v2330_v8  ;;  %v2383_v17 = vld [vmem:[%s2296_s6 + $0x88] sm:$0xff]  ;;  %v2386_v18 = vld [vmem:[%s2296_s6 + $0x80] sm:$0xff] }
  0x24   : > { %273 = vst.msk [vmem:[#allocation2 + $0x51] sm:$0xff] %vm263_vm1, %v2340_v10  ;;  %275 = vst.msk [vmem:[#allocation2 + $0x61] sm:$0xff] %vm263_vm1, %v2352_v12  ;;  %v2389_v19 = vld [vmem:[%s2296_s6 + $0x98] sm:$0xff]  ;;  %v2396_v20 = vld [vmem:[%s2296_s6 + $0x90] sm:$0xff]  ;;  %335 = vrot.lane.b32.xlu1 %v2315_v5, %s2171_s7  ;;  %333 = vrot.lane.b32.xlu0 %v2324_v6, %s2171_s7 }
  0x25   : > { %274 = vst.msk [vmem:[#allocation2 + $0x59] sm:$0x7f] %vm265_vm2, %v2337_v9  ;;  %276 = vst.msk [vmem:[#allocation2 + $0x69] sm:$0x7f] %vm265_vm2, %v2343_v11  ;;  %v2399_v21 = vld [vmem:[%s2296_s6 + $0xa8] sm:$0xff]  ;;  %v2402_v22 = vld [vmem:[%s2296_s6 + $0xa0] sm:$0xff] }
  0x26   : > { %277 = vst.msk [vmem:[#allocation2 + $0x71] sm:$0xff] %vm263_vm1, %v2358_v14  ;;  %279 = vst.msk [vmem:[#allocation2 + $0x81] sm:$0xff] %vm263_vm1, %v2374_v16  ;;  %v2411_v23 = vld [vmem:[%s2296_s6 + $0xb8] sm:$0xff]  ;;  %v2414_v24 = vld [vmem:[%s2296_s6 + $0xb0] sm:$0xff] }
  0x27   : > { %278 = vst.msk [vmem:[#allocation2 + $0x79] sm:$0x7f] %vm265_vm2, %v2355_v13  ;;  %280 = vst.msk [vmem:[#allocation2 + $0x89] sm:$0x7f] %vm265_vm2, %v2371_v15  ;;  %v2417_v25 = vld [vmem:[%s2296_s6 + $0xc8] sm:$0xff]  ;;  %v2430_v26 = vld [vmem:[%s2296_s6 + $0xc0] sm:$0xff] }
  0x28   : > { %281 = vst.msk [vmem:[#allocation2 + $0x91] sm:$0xff] %vm263_vm1, %v2386_v18  ;;  %283 = vst.msk [vmem:[#allocation2 + $0xa1] sm:$0xff] %vm263_vm1, %v2396_v20  ;;  %v2433_v27 = vld [vmem:[%s2296_s6 + $0xd8] sm:$0xff]  ;;  %v2442_v28 = vld [vmem:[%s2296_s6 + $0xd0] sm:$0xff]  ;;  %339 = vrot.lane.b32.xlu1 %v2327_v7, %s2171_s7  ;;  %337 = vrot.lane.b32.xlu0 %v2330_v8, %s2171_s7 }
  0x29   : > { %282 = vst.msk [vmem:[#allocation2 + $0x99] sm:$0x7f] %vm265_vm2, %v2383_v17  ;;  %284 = vst.msk [vmem:[#allocation2 + $0xa9] sm:$0x7f] %vm265_vm2, %v2389_v19  ;;  %v2445_v29 = vld [vmem:[%s2296_s6 + $0xe8] sm:$0xff]  ;;  %v2448_v30 = vld [vmem:[%s2296_s6 + $0xe0] sm:$0xff] }
  0x2a   : > { %285 = vst.msk [vmem:[#allocation2 + $0xb1] sm:$0xff] %vm263_vm1, %v2402_v22  ;;  %287 = vst.msk [vmem:[#allocation2 + $0xc1] sm:$0xff] %vm263_vm1, %v2414_v24 }
  0x2b   : > { %286 = vst.msk [vmem:[#allocation2 + $0xb9] sm:$0x7f] %vm265_vm2, %v2399_v21  ;;  %288 = vst.msk [vmem:[#allocation2 + $0xc9] sm:$0x7f] %vm265_vm2, %v2411_v23 }
  0x2c   : > { %290 = vst.msk [vmem:[#allocation2 + $0xd9] sm:$0x7f] %vm265_vm2, %v2417_v25  ;;  %292 = vst.msk [vmem:[#allocation2 + $0xe9] sm:$0x7f] %vm265_vm2, %v2433_v27  ;;  %343 = vrot.lane.b32.xlu1 %v2337_v9, %s2171_s7  ;;  %341 = vrot.lane.b32.xlu0 %v2340_v10, %s2171_s7 }
  0x2d   : > { %289 = vst.msk [vmem:[#allocation2 + $0xd1] sm:$0xff] %vm263_vm1, %v2430_v26  ;;  %291 = vst.msk [vmem:[#allocation2 + $0xe1] sm:$0xff] %vm263_vm1, %v2442_v28 }
  0x2e   : > { %293 = vst.msk [vmem:[#allocation2 + $0xf1] sm:$0xff] %vm263_vm1, %v2448_v30  ;;  %vm1294_vm1 = vcmask 294144  }
  0x2f   : > { %294 = vst.msk [vmem:[#allocation2 + $0xf9] sm:$0x7f] %vm265_vm2, %v2445_v29 }
  0x30   : > { %347 = vrot.lane.b32.xlu1 %v2343_v11, %s2171_s7  ;;  %345 = vrot.lane.b32.xlu0 %v2352_v12, %s2171_s7 }
  0x34   : > { %351 = vrot.lane.b32.xlu1 %v2355_v13, %s2171_s7  ;;  %349 = vrot.lane.b32.xlu0 %v2358_v14, %s2171_s7 }
  0x38   : > { %355 = vrot.lane.b32.xlu1 %v2371_v15, %s2171_s7  ;;  %353 = vrot.lane.b32.xlu0 %v2374_v16, %s2171_s7 }
  0x3c   : > { %359 = vrot.lane.b32.xlu1 %v2383_v17, %s2171_s7  ;;  %357 = vrot.lane.b32.xlu0 %v2386_v18, %s2171_s7 }
  0x40   : > { %363 = vrot.lane.b32.xlu1 %v2389_v19, %s2171_s7  ;;  %361 = vrot.lane.b32.xlu0 %v2396_v20, %s2171_s7 }
  0x44   : > { %367 = vrot.lane.b32.xlu1 %v2399_v21, %s2171_s7  ;;  %365 = vrot.lane.b32.xlu0 %v2402_v22, %s2171_s7 }
  0x48   : > { %371 = vrot.lane.b32.xlu1 %v2411_v23, %s2171_s7  ;;  %369 = vrot.lane.b32.xlu0 %v2414_v24, %s2171_s7 }
  0x4c   : > { %375 = vrot.lane.b32.xlu1 %v2417_v25, %s2171_s7  ;;  %373 = vrot.lane.b32.xlu0 %v2430_v26, %s2171_s7 }
  0x50   : > { %379 = vrot.lane.b32.xlu1 %v2433_v27, %s2171_s7  ;;  %377 = vrot.lane.b32.xlu0 %v2442_v28, %s2171_s7 }
  0x54   : > { %383 = vrot.lane.b32.xlu1 %v2445_v29, %s2171_s7  ;;  %381 = vrot.lane.b32.xlu0 %v2448_v30, %s2171_s7  ;;  %s2178_s7 = smov 32  }
  0x58   : > { %448 = vrot.lane.b32.xlu1 %v2312_v4, %s2172_s8  ;;  %446 = vrot.lane.b32.xlu0 %v2302_v2, %s2172_s8 }
  0x5c   : > { %452 = vrot.lane.b32.xlu1 %v2305_v3, %s2172_s8  ;;  %450 = vrot.lane.b32.xlu0 %v2299_v1, %s2172_s8 }
  0x60   : > { %456 = vrot.lane.b32.xlu1 %v2315_v5, %s2172_s8  ;;  %454 = vrot.lane.b32.xlu0 %v2324_v6, %s2172_s8 }
  0x64   : > { %460 = vrot.lane.b32.xlu1 %v2327_v7, %s2172_s8  ;;  %458 = vrot.lane.b32.xlu0 %v2330_v8, %s2172_s8 }
  0x68   : > { %464 = vrot.lane.b32.xlu1 %v2337_v9, %s2172_s8  ;;  %462 = vrot.lane.b32.xlu0 %v2340_v10, %s2172_s8 }
  0x6c   : > { %468 = vrot.lane.b32.xlu1 %v2343_v11, %s2172_s8  ;;  %466 = vrot.lane.b32.xlu0 %v2352_v12, %s2172_s8 }
  0x70   : > { %472 = vrot.lane.b32.xlu1 %v2355_v13, %s2172_s8  ;;  %470 = vrot.lane.b32.xlu0 %v2358_v14, %s2172_s8 }
  0x74   : > { %476 = vrot.lane.b32.xlu1 %v2371_v15, %s2172_s8  ;;  %474 = vrot.lane.b32.xlu0 %v2374_v16, %s2172_s8 }
  0x78   : > { %480 = vrot.lane.b32.xlu1 %v2383_v17, %s2172_s8  ;;  %478 = vrot.lane.b32.xlu0 %v2386_v18, %s2172_s8 }
  0x7c   : > { %484 = vrot.lane.b32.xlu1 %v2389_v19, %s2172_s8  ;;  %482 = vrot.lane.b32.xlu0 %v2396_v20, %s2172_s8 }
  0x80   : > { %488 = vrot.lane.b32.xlu1 %v2399_v21, %s2172_s8  ;;  %486 = vrot.lane.b32.xlu0 %v2402_v22, %s2172_s8 }
  0x84   : > { %492 = vrot.lane.b32.xlu1 %v2411_v23, %s2172_s8  ;;  %490 = vrot.lane.b32.xlu0 %v2414_v24, %s2172_s8 }
  0x88   : > { %496 = vrot.lane.b32.xlu1 %v2417_v25, %s2172_s8  ;;  %494 = vrot.lane.b32.xlu0 %v2430_v26, %s2172_s8 }
  0x8c   : > { %500 = vrot.lane.b32.xlu1 %v2433_v27, %s2172_s8  ;;  %498 = vrot.lane.b32.xlu0 %v2442_v28, %s2172_s8 }
  0x8e   : > { %v330_v31 = vpop.permute.xlu1 %329  ;;  %v326_v32 = vpop.permute.xlu0 %325 }
  0x8f   : > { %418 = vst.msk [vmem:[#allocation2 + $0x20] sm:$0xff] %vm415_vm3, %v330_v31  ;;  %416 = vst.msk [vmem:[#allocation2 + $0x10] sm:$0xff] %vm415_vm3, %v326_v32 }
  0x90   : > { %504 = vrot.lane.b32.xlu1 %v2445_v29, %s2172_s8  ;;  %502 = vrot.lane.b32.xlu0 %v2448_v30, %s2172_s8 }
  0x92   : > { %v332_v33 = vpop.permute.xlu1 %331  ;;  %v328_v34 = vpop.permute.xlu0 %327 }
  0x93   : > { %419 = vst.msk [vmem:[#allocation2 + $0x28] sm:$0xff] %vm415_vm3, %v332_v33  ;;  %417 = vst.msk [vmem:[#allocation2 + $0x18] sm:$0xff] %vm415_vm3, %v328_v34 }
  0x94   : > { %572 = vrot.lane.b32.xlu1 %v2312_v4, %s2173_s9  ;;  %570 = vrot.lane.b32.xlu0 %v2302_v2, %s2173_s9 }
  0x96   : > { %v336_v35 = vpop.permute.xlu1 %335  ;;  %v334_v36 = vpop.permute.xlu0 %333 }
  0x97   : > { %421 = vst.msk [vmem:[#allocation2 + $0x38] sm:$0xff] %vm415_vm3, %v336_v35  ;;  %420 = vst.msk [vmem:[#allocation2 + $0x30] sm:$0xff] %vm415_vm3, %v334_v36 }
  0x98   : > { %576 = vrot.lane.b32.xlu1 %v2305_v3, %s2173_s9  ;;  %574 = vrot.lane.b32.xlu0 %v2299_v1, %s2173_s9 }
  0x9a   : > { %v340_v37 = vpop.permute.xlu1 %339  ;;  %v338_v38 = vpop.permute.xlu0 %337 }
  0x9b   : > { %423 = vst.msk [vmem:[#allocation2 + $0x48] sm:$0xff] %vm415_vm3, %v340_v37  ;;  %422 = vst.msk [vmem:[#allocation2 + $0x40] sm:$0xff] %vm415_vm3, %v338_v38 }
  0x9c   : > { %580 = vrot.lane.b32.xlu1 %v2315_v5, %s2173_s9  ;;  %578 = vrot.lane.b32.xlu0 %v2324_v6, %s2173_s9 }
  0x9e   : > { %v344_v39 = vpop.permute.xlu1 %343  ;;  %v342_v40 = vpop.permute.xlu0 %341 }
  0x9f   : > { %425 = vst.msk [vmem:[#allocation2 + $0x58] sm:$0xff] %vm415_vm3, %v344_v39  ;;  %424 = vst.msk [vmem:[#allocation2 + $0x50] sm:$0xff] %vm415_vm3, %v342_v40  ;;  %v1356_v39 = vld [vmem:[%s3433_s1] sm:$0xff]  ;;  %v1357_v40 = vld [vmem:[%s3433_s1 + $0x8] sm:$0xff] }
  0xa0   : > { %584 = vrot.lane.b32.xlu1 %v2327_v7, %s2173_s9  ;;  %582 = vrot.lane.b32.xlu0 %v2330_v8, %s2173_s9 }
  0xa2   : > { %v348_v41 = vpop.permute.xlu1 %347  ;;  %v346_v42 = vpop.permute.xlu0 %345 }
  0xa3   : > { %427 = vst.msk [vmem:[#allocation2 + $0x68] sm:$0xff] %vm415_vm3, %v348_v41  ;;  %426 = vst.msk [vmem:[#allocation2 + $0x60] sm:$0xff] %vm415_vm3, %v346_v42  ;;  %v2043_v41 = vpack.c.bf16 %v1357_v40, %v1356_v39 }
  0xa4   : > { %588 = vrot.lane.b32.xlu1 %v2337_v9, %s2173_s9  ;;  %586 = vrot.lane.b32.xlu0 %v2340_v10, %s2173_s9 }
  0xa5   : > { %2044 = vmatprep.subr.bf16.mxu0 %v2043_v41  ;;  %2051 = vmatprep.subr.bf16.mxu1 %v2043_v41 }
  0xa6   : > { %v352_v43 = vpop.permute.xlu1 %351  ;;  %v350_v44 = vpop.permute.xlu0 %349  ;;  %2046 = vmatpush3.bf16.msra.mxu0 %v2043_v41  ;;  %2054 = vmatpush3.bf16.msra.mxu1 %v2043_v41 }
  0xa7   : > { %429 = vst.msk [vmem:[#allocation2 + $0x78] sm:$0xff] %vm415_vm3, %v352_v43  ;;  %428 = vst.msk [vmem:[#allocation2 + $0x70] sm:$0xff] %vm415_vm3, %v350_v44  ;;  %v1358_v44 = vld [vmem:[%s3433_s1 + $0x10] sm:$0xff] }
  0xa8   : > { %592 = vrot.lane.b32.xlu1 %v2343_v11, %s2173_s9  ;;  %590 = vrot.lane.b32.xlu0 %v2352_v12, %s2173_s9 }
  0xaa   : > { %v356_v45 = vpop.permute.xlu1 %355  ;;  %v354_v46 = vpop.permute.xlu0 %353 }
  0xab   : > { %431 = vst.msk [vmem:[#allocation2 + $0x88] sm:$0xff] %vm415_vm3, %v356_v45  ;;  %430 = vst.msk [vmem:[#allocation2 + $0x80] sm:$0xff] %vm415_vm3, %v354_v46  ;;  %v1359_v45 = vld [vmem:[%s3433_s1 + $0x18] sm:$0xff] }
  0xac   : > { %596 = vrot.lane.b32.xlu1 %v2355_v13, %s2173_s9  ;;  %594 = vrot.lane.b32.xlu0 %v2358_v14, %s2173_s9  ;;  %v2047_v46 = vpack.c.bf16 %v1359_v45, %v1358_v44 }
  0xae   : > { %v360_v47 = vpop.permute.xlu1 %359  ;;  %v358_v48 = vpop.permute.xlu0 %357  ;;  %2048 = vmatprep.subr.bf16.mxu0 %v2047_v46  ;;  %2052 = vmatprep.subr.bf16.mxu1 %v2047_v46 }
  0xaf   : > { %433 = vst.msk [vmem:[#allocation2 + $0x98] sm:$0xff] %vm415_vm3, %v360_v47  ;;  %432 = vst.msk [vmem:[#allocation2 + $0x90] sm:$0xff] %vm415_vm3, %v358_v48  ;;  %2050 = vmatpush3.bf16.msra.mxu0 %v2047_v46  ;;  %2055 = vmatpush3.bf16.msra.mxu1 %v2047_v46 }
  0xb0   : > { %600 = vrot.lane.b32.xlu1 %v2371_v15, %s2173_s9  ;;  %598 = vrot.lane.b32.xlu0 %v2374_v16, %s2173_s9 }
  0xb2   : > { %v364_v49 = vpop.permute.xlu1 %363  ;;  %v362_v50 = vpop.permute.xlu0 %361 }
  0xb3   : > { %435 = vst.msk [vmem:[#allocation2 + $0xa8] sm:$0xff] %vm415_vm3, %v364_v49  ;;  %434 = vst.msk [vmem:[#allocation2 + $0xa0] sm:$0xff] %vm415_vm3, %v362_v50  ;;  %v1360_v49 = vld [vmem:[%s3433_s1 + $0x20] sm:$0xf] }
  0xb4   : > { %604 = vrot.lane.b32.xlu1 %v2383_v17, %s2173_s9  ;;  %602 = vrot.lane.b32.xlu0 %v2386_v18, %s2173_s9 }
  0xb5   : > { %1993 = vmatprep.subr.msk.mxu0 %vm1464_vm6, %v1360_v49  ;;  %2053 = vmatprep.subr.msk.mxu1 %vm1464_vm6, %v1360_v49 }
  0xb6   : > { %v368_v51 = vpop.permute.xlu1 %367  ;;  %v366_v52 = vpop.permute.xlu0 %365  ;;  %1994 = vmatpush3.msk.msra.mxu0 %vm1464_vm6, %v1360_v49  ;;  %2056 = vmatpush3.msk.msra.mxu1 %vm1464_vm6, %v1360_v49 }
  0xb7   : > { %437 = vst.msk [vmem:[#allocation2 + $0xb8] sm:$0xff] %vm415_vm3, %v368_v51  ;;  %436 = vst.msk [vmem:[#allocation2 + $0xb0] sm:$0xff] %vm415_vm3, %v366_v52 }
  0xb8   : > { %608 = vrot.lane.b32.xlu1 %v2389_v19, %s2173_s9  ;;  %606 = vrot.lane.b32.xlu0 %v2396_v20, %s2173_s9 }
  0xba   : > { %v372_v53 = vpop.permute.xlu1 %371  ;;  %v370_v54 = vpop.permute.xlu0 %369 }
  0xbb   : > { %439 = vst.msk [vmem:[#allocation2 + $0xc8] sm:$0xff] %vm415_vm3, %v372_v53  ;;  %438 = vst.msk [vmem:[#allocation2 + $0xc0] sm:$0xff] %vm415_vm3, %v370_v54 }
  0xbc   : > { %612 = vrot.lane.b32.xlu1 %v2399_v21, %s2173_s9  ;;  %610 = vrot.lane.b32.xlu0 %v2402_v22, %s2173_s9 }
  0xbe   : > { %v376_v55 = vpop.permute.xlu1 %375  ;;  %v374_v56 = vpop.permute.xlu0 %373 }
  0xbf   : > { %441 = vst.msk [vmem:[#allocation2 + $0xd8] sm:$0xff] %vm415_vm3, %v376_v55  ;;  %440 = vst.msk [vmem:[#allocation2 + $0xd0] sm:$0xff] %vm415_vm3, %v374_v56 }
  0xc0   : > { %616 = vrot.lane.b32.xlu1 %v2411_v23, %s2173_s9  ;;  %614 = vrot.lane.b32.xlu0 %v2414_v24, %s2173_s9 }
  0xc2   : > { %v380_v57 = vpop.permute.xlu1 %379  ;;  %v378_v58 = vpop.permute.xlu0 %377 }
  0xc3   : > { %443 = vst.msk [vmem:[#allocation2 + $0xe8] sm:$0xff] %vm415_vm3, %v380_v57  ;;  %442 = vst.msk [vmem:[#allocation2 + $0xe0] sm:$0xff] %vm415_vm3, %v378_v58 }
  0xc4   : > { %620 = vrot.lane.b32.xlu1 %v2417_v25, %s2173_s9  ;;  %618 = vrot.lane.b32.xlu0 %v2430_v26, %s2173_s9 }
  0xc6   : > { %v384_v59 = vpop.permute.xlu1 %383  ;;  %v382_v60 = vpop.permute.xlu0 %381 }
  0xc7   : > { %445 = vst.msk [vmem:[#allocation2 + $0xf8] sm:$0xff] %vm415_vm3, %v384_v59  ;;  %444 = vst.msk [vmem:[#allocation2 + $0xf0] sm:$0xff] %vm415_vm3, %v382_v60  ;;  %vm1791_vm3 = vcmask 261120  }
  0xc8   : > { %700 = vrot.lane.b32.xlu1 %v2302_v2, %s2174_s10  ;;  %622 = vrot.lane.b32.xlu0 %v2442_v28, %s2173_s9 }
  0xca   : > { %v449_v61 = vpop.permute.xlu1 %448  ;;  %v447_v62 = vpop.permute.xlu0 %446 }
  0xcb   : > { %539 = vst.msk [vmem:[#allocation2 + $0x17] sm:$0xff] %vm538_vm4, %v449_v61 }
  0xcc   : > { %537 = vst.msk [vmem:[#allocation2 + $0xf] sm:$0xfe] %vm536_vm5, %v447_v62  ;;  %732 = vrot.lane.b32.xlu1 %v2386_v18, %s2174_s10  ;;  %702 = vrot.lane.b32.xlu0 %v2312_v4, %s2174_s10 }
  0xce   : > { %v453_v63 = vpop.permute.xlu1 %452  ;;  %v451_v0 = vpop.permute.xlu0 %450 }
  0xcf   : > { %541 = vst.msk [vmem:[#allocation2 + $0x27] sm:$0xff] %vm538_vm4, %v453_v63 }
  0xd0   : > { %540 = vst.msk [vmem:[#allocation2 + $0x1f] sm:$0xfe] %vm536_vm5, %v451_v0  ;;  %829 = vrot.lane.b32.xlu1 %v2302_v2, %s2175_s11  ;;  %734 = vrot.lane.b32.xlu0 %v2383_v17, %s2174_s10 }
  0xd2   : > { %v457_v31 = vpop.permute.xlu1 %456  ;;  %v455_v32 = vpop.permute.xlu0 %454 }
  0xd3   : > { %543 = vst.msk [vmem:[#allocation2 + $0x37] sm:$0xff] %vm538_vm4, %v457_v31 }
  0xd4   : > { %542 = vst.msk [vmem:[#allocation2 + $0x2f] sm:$0xfe] %vm536_vm5, %v455_v32  ;;  %861 = vrot.lane.b32.xlu1 %v2386_v18, %s2175_s11  ;;  %831 = vrot.lane.b32.xlu0 %v2312_v4, %s2175_s11 }
  0xd6   : > { %v461_v33 = vpop.permute.xlu1 %460  ;;  %v459_v34 = vpop.permute.xlu0 %458 }
  0xd7   : > { %545 = vst.msk [vmem:[#allocation2 + $0x47] sm:$0xff] %vm538_vm4, %v461_v33 }
  0xd8   : > { %544 = vst.msk [vmem:[#allocation2 + $0x3f] sm:$0xfe] %vm536_vm5, %v459_v34  ;;  %959 = vrot.lane.b32.xlu1 %v2299_v1, %s2176_s12  ;;  %863 = vrot.lane.b32.xlu0 %v2383_v17, %s2175_s11 }
  0xda   : > { %v465_v2 = vpop.permute.xlu1 %464  ;;  %v463_v35 = vpop.permute.xlu0 %462 }
  0xdb   : > { %547 = vst.msk [vmem:[#allocation2 + $0x57] sm:$0xff] %vm538_vm4, %v465_v2 }
  0xdc   : > { %546 = vst.msk [vmem:[#allocation2 + $0x4f] sm:$0xfe] %vm536_vm5, %v463_v35  ;;  %991 = vrot.lane.b32.xlu1 %v2396_v20, %s2176_s12  ;;  %961 = vrot.lane.b32.xlu0 %v2305_v3, %s2176_s12 }
  0xde   : > { %v469_v4 = vpop.permute.xlu1 %468  ;;  %v467_v36 = vpop.permute.xlu0 %466 }
  0xdf   : > { %549 = vst.msk [vmem:[#allocation2 + $0x67] sm:$0xff] %vm538_vm4, %v469_v4 }
  0xe0   : > { %548 = vst.msk [vmem:[#allocation2 + $0x5f] sm:$0xfe] %vm536_vm5, %v467_v36  ;;  %1081 = vrot.lane.b32.xlu1 %v2299_v1, %s2177_s13  ;;  %993 = vrot.lane.b32.xlu0 %v2389_v19, %s2176_s12 }
  0xe2   : > { %v473_v37 = vpop.permute.xlu1 %472  ;;  %v471_v38 = vpop.permute.xlu0 %470 }
  0xe3   : > { %551 = vst.msk [vmem:[#allocation2 + $0x77] sm:$0xff] %vm538_vm4, %v473_v37 }
  0xe4   : > { %550 = vst.msk [vmem:[#allocation2 + $0x6f] sm:$0xfe] %vm536_vm5, %v471_v38  ;;  %1113 = vrot.lane.b32.xlu1 %v2396_v20, %s2177_s13  ;;  %1083 = vrot.lane.b32.xlu0 %v2305_v3, %s2177_s13 }
  0xe6   : > { %v477_v42 = vpop.permute.xlu1 %476  ;;  %v475_v43 = vpop.permute.xlu0 %474 }
  0xe7   : > { %553 = vst.msk [vmem:[#allocation2 + $0x87] sm:$0xff] %vm538_vm4, %v477_v42 }
  0xe8   : > { %552 = vst.msk [vmem:[#allocation2 + $0x7f] sm:$0xfe] %vm536_vm5, %v475_v43  ;;  %704 = vrot.lane.b32.xlu1 %v2299_v1, %s2174_s10  ;;  %1115 = vrot.lane.b32.xlu0 %v2389_v19, %s2177_s13 }
  0xea   : > { %v481_v47 = vpop.permute.xlu1 %480  ;;  %v479_v48 = vpop.permute.xlu0 %478 }
  0xeb   : > { %555 = vst.msk [vmem:[#allocation2 + $0x97] sm:$0xff] %vm538_vm4, %v481_v47 }
  0xec   : > { %554 = vst.msk [vmem:[#allocation2 + $0x8f] sm:$0xfe] %vm536_vm5, %v479_v48  ;;  %736 = vrot.lane.b32.xlu1 %v2396_v20, %s2174_s10  ;;  %706 = vrot.lane.b32.xlu0 %v2305_v3, %s2174_s10 }
  0xee   : > { %v485_v50 = vpop.permute.xlu1 %484  ;;  %v483_v51 = vpop.permute.xlu0 %482 }
  0xef   : > { %557 = vst.msk [vmem:[#allocation2 + $0xa7] sm:$0xff] %vm538_vm4, %v485_v50 }
  0xf0   : > { %556 = vst.msk [vmem:[#allocation2 + $0x9f] sm:$0xfe] %vm536_vm5, %v483_v51  ;;  %1202 = vrot.lane.b32.xlu1 %v2299_v1, %s2178_s7  ;;  %738 = vrot.lane.b32.xlu0 %v2389_v19, %s2174_s10 }
  0xf2   : > { %v489_v52 = vpop.permute.xlu1 %488  ;;  %v487_v53 = vpop.permute.xlu0 %486 }
  0xf3   : > { %559 = vst.msk [vmem:[#allocation2 + $0xb7] sm:$0xff] %vm538_vm4, %v489_v52 }
  0xf4   : > { %558 = vst.msk [vmem:[#allocation2 + $0xaf] sm:$0xfe] %vm536_vm5, %v487_v53  ;;  %1234 = vrot.lane.b32.xlu1 %v2396_v20, %s2178_s7  ;;  %1204 = vrot.lane.b32.xlu0 %v2305_v3, %s2178_s7 }
  0xf6   : > { %v493_v54 = vpop.permute.xlu1 %492  ;;  %v491_v55 = vpop.permute.xlu0 %490 }
  0xf7   : > { %561 = vst.msk [vmem:[#allocation2 + $0xc7] sm:$0xff] %vm538_vm4, %v493_v54 }
  0xf8   : > { %560 = vst.msk [vmem:[#allocation2 + $0xbf] sm:$0xfe] %vm536_vm5, %v491_v55  ;;  %833 = vrot.lane.b32.xlu1 %v2299_v1, %s2175_s11  ;;  %1236 = vrot.lane.b32.xlu0 %v2389_v19, %s2178_s7 }
  0xfa   : > { %v497_v56 = vpop.permute.xlu1 %496  ;;  %v495_v57 = vpop.permute.xlu0 %494 }
  0xfb   : > { %563 = vst.msk [vmem:[#allocation2 + $0xd7] sm:$0xff] %vm538_vm4, %v497_v56 }
  0xfc   : > { %562 = vst.msk [vmem:[#allocation2 + $0xcf] sm:$0xfe] %vm536_vm5, %v495_v57  ;;  %865 = vrot.lane.b32.xlu1 %v2396_v20, %s2175_s11  ;;  %835 = vrot.lane.b32.xlu0 %v2305_v3, %s2175_s11 }
  0xfe   : > { %v501_v58 = vpop.permute.xlu1 %500  ;;  %v499_v59 = vpop.permute.xlu0 %498 }
  0xff   : > { %565 = vst.msk [vmem:[#allocation2 + $0xe7] sm:$0xff] %vm538_vm4, %v501_v58 }
 0x100   : > { %564 = vst.msk [vmem:[#allocation2 + $0xdf] sm:$0xfe] %vm536_vm5, %v499_v59  ;;  %963 = vrot.lane.b32.xlu1 %v2324_v6, %s2176_s12  ;;  %867 = vrot.lane.b32.xlu0 %v2389_v19, %s2175_s11 }
 0x102   : > { %v505_v1 = vpop.permute.xlu1 %504  ;;  %v503_v60 = vpop.permute.xlu0 %502 }
 0x103   : > { %567 = vst.msk [vmem:[#allocation2 + $0xf7] sm:$0xff] %vm538_vm4, %v505_v1 }
 0x104   : > { %566 = vst.msk [vmem:[#allocation2 + $0xef] sm:$0xfe] %vm536_vm5, %v503_v60  ;;  %995 = vrot.lane.b32.xlu1 %v2402_v22, %s2176_s12  ;;  %965 = vrot.lane.b32.xlu0 %v2315_v5, %s2176_s12 }
 0x106   : > { %v573_v3 = vpop.permute.xlu1 %572  ;;  %v571_v20 = vpop.permute.xlu0 %570 }
 0x107   : > { %669 = vst.msk [vmem:[#allocation2 + $0x9] sm:$0x7f] %vm668_vm7, %v573_v3 }
 0x108   : > { %667 = vst.msk [vmem:[#allocation2 + $0x1] sm:$0xff] %vm666_vm8, %v571_v20  ;;  %1085 = vrot.lane.b32.xlu1 %v2324_v6, %s2177_s13  ;;  %997 = vrot.lane.b32.xlu0 %v2399_v21, %s2176_s12 }
 0x10a   : > { %v577_v19 = vpop.permute.xlu1 %576  ;;  %v575_v61 = vpop.permute.xlu0 %574 }
 0x10b   : > { %671 = vst.msk [vmem:[#allocation2 + $0x19] sm:$0x7f] %vm668_vm7, %v577_v19 }
 0x10c   : > { %670 = vst.msk [vmem:[#allocation2 + $0x11] sm:$0xff] %vm666_vm8, %v575_v61  ;;  %1117 = vrot.lane.b32.xlu1 %v2402_v22, %s2177_s13  ;;  %1087 = vrot.lane.b32.xlu0 %v2315_v5, %s2177_s13 }
 0x10e   : > { %v581_v62 = vpop.permute.xlu1 %580  ;;  %v579_v63 = vpop.permute.xlu0 %578 }
 0x10f   : > { %673 = vst.msk [vmem:[#allocation2 + $0x29] sm:$0x7f] %vm668_vm7, %v581_v62 }
 0x110   : > { %672 = vst.msk [vmem:[#allocation2 + $0x21] sm:$0xff] %vm666_vm8, %v579_v63  ;;  %708 = vrot.lane.b32.xlu1 %v2324_v6, %s2174_s10  ;;  %1119 = vrot.lane.b32.xlu0 %v2399_v21, %s2177_s13 }
 0x112   : > { %v585_v0 = vpop.permute.xlu1 %584  ;;  %v583_v31 = vpop.permute.xlu0 %582 }
 0x113   : > { %675 = vst.msk [vmem:[#allocation2 + $0x39] sm:$0x7f] %vm668_vm7, %v585_v0 }
 0x114   : > { %674 = vst.msk [vmem:[#allocation2 + $0x31] sm:$0xff] %vm666_vm8, %v583_v31  ;;  %740 = vrot.lane.b32.xlu1 %v2402_v22, %s2174_s10  ;;  %710 = vrot.lane.b32.xlu0 %v2315_v5, %s2174_s10 }
 0x116   : > { %v589_v32 = vpop.permute.xlu1 %588  ;;  %v587_v33 = vpop.permute.xlu0 %586 }
 0x117   : > { %677 = vst.msk [vmem:[#allocation2 + $0x49] sm:$0x7f] %vm668_vm7, %v589_v32 }
 0x118   : > { %676 = vst.msk [vmem:[#allocation2 + $0x41] sm:$0xff] %vm666_vm8, %v587_v33  ;;  %1206 = vrot.lane.b32.xlu1 %v2324_v6, %s2178_s7  ;;  %742 = vrot.lane.b32.xlu0 %v2399_v21, %s2174_s10 }
 0x11a   : > { %v593_v34 = vpop.permute.xlu1 %592  ;;  %v591_v2 = vpop.permute.xlu0 %590 }
 0x11b   : > { %679 = vst.msk [vmem:[#allocation2 + $0x59] sm:$0x7f] %vm668_vm7, %v593_v34 }
 0x11c   : > { %678 = vst.msk [vmem:[#allocation2 + $0x51] sm:$0xff] %vm666_vm8, %v591_v2  ;;  %1238 = vrot.lane.b32.xlu1 %v2402_v22, %s2178_s7  ;;  %1208 = vrot.lane.b32.xlu0 %v2315_v5, %s2178_s7 }
 0x11e   : > { %v597_v35 = vpop.permute.xlu1 %596  ;;  %v595_v4 = vpop.permute.xlu0 %594 }
 0x11f   : > { %681 = vst.msk [vmem:[#allocation2 + $0x69] sm:$0x7f] %vm668_vm7, %v597_v35 }
 0x120   : > { %680 = vst.msk [vmem:[#allocation2 + $0x61] sm:$0xff] %vm666_vm8, %v595_v4  ;;  %837 = vrot.lane.b32.xlu1 %v2324_v6, %s2175_s11  ;;  %1240 = vrot.lane.b32.xlu0 %v2399_v21, %s2178_s7 }
 0x122   : > { %v601_v36 = vpop.permute.xlu1 %600  ;;  %v599_v37 = vpop.permute.xlu0 %598 }
 0x123   : > { %683 = vst.msk [vmem:[#allocation2 + $0x79] sm:$0x7f] %vm668_vm7, %v601_v36 }
 0x124   : > { %682 = vst.msk [vmem:[#allocation2 + $0x71] sm:$0xff] %vm666_vm8, %v599_v37  ;;  %869 = vrot.lane.b32.xlu1 %v2402_v22, %s2175_s11  ;;  %839 = vrot.lane.b32.xlu0 %v2315_v5, %s2175_s11 }
 0x126   : > { %v605_v38 = vpop.permute.xlu1 %604  ;;  %v603_v39 = vpop.permute.xlu0 %602 }
 0x127   : > { %685 = vst.msk [vmem:[#allocation2 + $0x89] sm:$0x7f] %vm668_vm7, %v605_v38 }
 0x128   : > { %684 = vst.msk [vmem:[#allocation2 + $0x81] sm:$0xff] %vm666_vm8, %v603_v39  ;;  %967 = vrot.lane.b32.xlu1 %v2330_v8, %s2176_s12  ;;  %871 = vrot.lane.b32.xlu0 %v2399_v21, %s2175_s11 }
 0x12a   : > { %v609_v6 = vpop.permute.xlu1 %608  ;;  %v607_v40 = vpop.permute.xlu0 %606 }
 0x12b   : > { %687 = vst.msk [vmem:[#allocation2 + $0x99] sm:$0x7f] %vm668_vm7, %v609_v6 }
 0x12c   : > { %686 = vst.msk [vmem:[#allocation2 + $0x91] sm:$0xff] %vm666_vm8, %v607_v40  ;;  %999 = vrot.lane.b32.xlu1 %v2414_v24, %s2176_s12  ;;  %969 = vrot.lane.b32.xlu0 %v2327_v7, %s2176_s12 }
 0x12e   : > { %v613_v5 = vpop.permute.xlu1 %612  ;;  %v611_v22 = vpop.permute.xlu0 %610 }
 0x12f   : > { %689 = vst.msk [vmem:[#allocation2 + $0xa9] sm:$0x7f] %vm668_vm7, %v613_v5 }
 0x130   : > { %688 = vst.msk [vmem:[#allocation2 + $0xa1] sm:$0xff] %vm666_vm8, %v611_v22  ;;  %1089 = vrot.lane.b32.xlu1 %v2330_v8, %s2177_s13  ;;  %1001 = vrot.lane.b32.xlu0 %v2411_v23, %s2176_s12 }
 0x132   : > { %v617_v21 = vpop.permute.xlu1 %616  ;;  %v615_v41 = vpop.permute.xlu0 %614 }
 0x133   : > { %691 = vst.msk [vmem:[#allocation2 + $0xb9] sm:$0x7f] %vm668_vm7, %v617_v21 }
 0x134   : > { %690 = vst.msk [vmem:[#allocation2 + $0xb1] sm:$0xff] %vm666_vm8, %v615_v41  ;;  %1121 = vrot.lane.b32.xlu1 %v2414_v24, %s2177_s13  ;;  %1091 = vrot.lane.b32.xlu0 %v2327_v7, %s2177_s13 }
 0x136   : > { %v621_v42 = vpop.permute.xlu1 %620  ;;  %v619_v43 = vpop.permute.xlu0 %618 }
 0x137   : > { %693 = vst.msk [vmem:[#allocation2 + $0xc9] sm:$0x7f] %vm668_vm7, %v621_v42 }
 0x138   : > { %692 = vst.msk [vmem:[#allocation2 + $0xc1] sm:$0xff] %vm666_vm8, %v619_v43  ;;  %712 = vrot.lane.b32.xlu1 %v2330_v8, %s2174_s10  ;;  %1123 = vrot.lane.b32.xlu0 %v2411_v23, %s2177_s13 }
 0x13a   : > { %v701_v44 = vpop.permute.xlu1 %700  ;;  %v623_v45 = vpop.permute.xlu0 %622 }
 0x13b   : > { %797 = vst.msk [vmem:[#allocation2] sm:$0xff] %vm796_vm9, %v701_v44 }
 0x13c   : > { %694 = vst.msk [vmem:[#allocation2 + $0xd1] sm:$0xff] %vm666_vm8, %v623_v45  ;;  %744 = vrot.lane.b32.xlu1 %v2414_v24, %s2174_s10  ;;  %714 = vrot.lane.b32.xlu0 %v2327_v7, %s2174_s10 }
 0x13e   : > { %v733_v46 = vpop.permute.xlu1 %732  ;;  %v703_v47 = vpop.permute.xlu0 %702 }
 0x13f   : > { %813 = vst.msk [vmem:[#allocation2 + $0x80] sm:$0xff] %vm796_vm9, %v733_v46  ;;  %798 = vst.msk [vmem:[#allocation2 + $0x8] sm:$0xff] %vm796_vm9, %v703_v47 }
 0x140   : > { %1210 = vrot.lane.b32.xlu1 %v2330_v8, %s2178_s7  ;;  %746 = vrot.lane.b32.xlu0 %v2411_v23, %s2174_s10 }
 0x142   : > { %v830_v48 = vpop.permute.xlu1 %829  ;;  %v735_v49 = vpop.permute.xlu0 %734 }
 0x143   : > { %926 = vst.msk [vmem:[#allocation2 - $0x1] sm:$0xfe] %vm925_vm10, %v830_v48 }
 0x144   : > { %814 = vst.msk [vmem:[#allocation2 + $0x88] sm:$0xff] %vm796_vm9, %v735_v49  ;;  %1242 = vrot.lane.b32.xlu1 %v2414_v24, %s2178_s7  ;;  %1212 = vrot.lane.b32.xlu0 %v2327_v7, %s2178_s7 }
 0x146   : > { %v862_v50 = vpop.permute.xlu1 %861  ;;  %v832_v51 = vpop.permute.xlu0 %831 }
 0x147   : > { %943 = vst.msk [vmem:[#allocation2 + $0x7f] sm:$0xfe] %vm925_vm10, %v862_v50 }
 0x148   : > { %928 = vst.msk [vmem:[#allocation2 + $0x7] sm:$0xff] %vm927_vm11, %v832_v51  ;;  %841 = vrot.lane.b32.xlu1 %v2330_v8, %s2175_s11  ;;  %1244 = vrot.lane.b32.xlu0 %v2411_v23, %s2178_s7 }
 0x14a   : > { %v960_v52 = vpop.permute.xlu1 %959  ;;  %v864_v53 = vpop.permute.xlu0 %863 }
 0x14b   : > { %1050 = vst.msk [vmem:[#allocation2 + $0x1] sm:$0xff] %vm1049_vm12, %v960_v52 }
 0x14c   : > { %944 = vst.msk [vmem:[#allocation2 + $0x87] sm:$0xff] %vm927_vm11, %v864_v53  ;;  %873 = vrot.lane.b32.xlu1 %v2414_v24, %s2175_s11  ;;  %843 = vrot.lane.b32.xlu0 %v2327_v7, %s2175_s11 }
 0x14e   : > { %v992_v54 = vpop.permute.xlu1 %991  ;;  %v962_v55 = vpop.permute.xlu0 %961 }
 0x14f   : > { %1067 = vst.msk [vmem:[#allocation2 + $0x81] sm:$0xff] %vm1049_vm12, %v992_v54 }
 0x150   : > { %1052 = vst.msk [vmem:[#allocation2 + $0x9] sm:$0x7f] %vm1051_vm13, %v962_v55  ;;  %971 = vrot.lane.b32.xlu1 %v2340_v10, %s2176_s12  ;;  %875 = vrot.lane.b32.xlu0 %v2411_v23, %s2175_s11 }
 0x152   : > { %v1082_v8 = vpop.permute.xlu1 %1081  ;;  %v994_v56 = vpop.permute.xlu0 %993 }
 0x153   : > { %1172 = vst.msk [vmem:[#allocation2] sm:$0xff] %vm1171_vm14, %v1082_v8 }
 0x154   : > { %1068 = vst.msk [vmem:[#allocation2 + $0x89] sm:$0x7f] %vm1051_vm13, %v994_v56  ;;  %1003 = vrot.lane.b32.xlu1 %v2430_v26, %s2176_s12  ;;  %973 = vrot.lane.b32.xlu0 %v2337_v9, %s2176_s12 }
 0x156   : > { %v1114_v7 = vpop.permute.xlu1 %1113  ;;  %v1084_v24 = vpop.permute.xlu0 %1083 }
 0x157   : > { %1188 = vst.msk [vmem:[#allocation2 + $0x80] sm:$0xff] %vm1171_vm14, %v1114_v7  ;;  %1173 = vst.msk [vmem:[#allocation2 + $0x8] sm:$0xff] %vm1171_vm14, %v1084_v24 }
 0x158   : > { %1093 = vrot.lane.b32.xlu1 %v2340_v10, %s2177_s13  ;;  %1005 = vrot.lane.b32.xlu0 %v2417_v25, %s2176_s12 }
 0x15a   : > { %v705_v23 = vpop.permute.xlu1 %704  ;;  %v1116_v57 = vpop.permute.xlu0 %1115 }
 0x15b   : > { %799 = vst.msk [vmem:[#allocation2 + $0x10] sm:$0xff] %vm796_vm9, %v705_v23 }
 0x15c   : > { %1189 = vst.msk [vmem:[#allocation2 + $0x88] sm:$0xff] %vm1171_vm14, %v1116_v57  ;;  %1125 = vrot.lane.b32.xlu1 %v2430_v26, %s2177_s13  ;;  %1095 = vrot.lane.b32.xlu0 %v2337_v9, %s2177_s13 }
 0x15e   : > { %v737_v58 = vpop.permute.xlu1 %736  ;;  %v707_v59 = vpop.permute.xlu0 %706 }
 0x15f   : > { %815 = vst.msk [vmem:[#allocation2 + $0x90] sm:$0xff] %vm796_vm9, %v737_v58  ;;  %800 = vst.msk [vmem:[#allocation2 + $0x18] sm:$0xff] %vm796_vm9, %v707_v59 }
 0x160   : > { %716 = vrot.lane.b32.xlu1 %v2340_v10, %s2174_s10  ;;  %1127 = vrot.lane.b32.xlu0 %v2417_v25, %s2177_s13 }
 0x162   : > { %v1203_v1 = vpop.permute.xlu1 %1202  ;;  %v739_v60 = vpop.permute.xlu0 %738 }
 0x163   : > { %1293 = vst.msk [vmem:[#allocation2 - $0x1] sm:$0xfe] %vm1292_vm15, %v1203_v1 }
 0x164   : > { %816 = vst.msk [vmem:[#allocation2 + $0x98] sm:$0xff] %vm796_vm9, %v739_v60  ;;  %748 = vrot.lane.b32.xlu1 %v2430_v26, %s2174_s10  ;;  %718 = vrot.lane.b32.xlu0 %v2337_v9, %s2174_s10 }
 0x166   : > { %v1235_v3 = vpop.permute.xlu1 %1234  ;;  %v1205_v20 = vpop.permute.xlu0 %1204 }
 0x167   : > { %1310 = vst.msk [vmem:[#allocation2 + $0x7f] sm:$0xfe] %vm1292_vm15, %v1235_v3 }
 0x168   : > { %1295 = vst.msk [vmem:[#allocation2 + $0x7] sm:$0xff] %vm1294_vm1, %v1205_v20  ;;  %1214 = vrot.lane.b32.xlu1 %v2340_v10, %s2178_s7  ;;  %750 = vrot.lane.b32.xlu0 %v2417_v25, %s2174_s10 }
 0x16a   : > { %v834_v19 = vpop.permute.xlu1 %833  ;;  %v1237_v61 = vpop.permute.xlu0 %1236 }
 0x16b   : > { %929 = vst.msk [vmem:[#allocation2 + $0xf] sm:$0xfe] %vm925_vm10, %v834_v19 }
 0x16c   : > { %1311 = vst.msk [vmem:[#allocation2 + $0x87] sm:$0xff] %vm1294_vm1, %v1237_v61  ;;  %1246 = vrot.lane.b32.xlu1 %v2430_v26, %s2178_s7  ;;  %1216 = vrot.lane.b32.xlu0 %v2337_v9, %s2178_s7 }
 0x16e   : > { %v866_v62 = vpop.permute.xlu1 %865  ;;  %v836_v63 = vpop.permute.xlu0 %835 }
 0x16f   : > { %v1324_v0 = vld [vmem:[#allocation2] sm:$0xff]  ;;  %v1325_v31 = vld [vmem:[#allocation2 + $0x8] sm:$0xff]  ;;  %945 = vst.msk [vmem:[#allocation2 + $0x8f] sm:$0xfe] %vm925_vm10, %v866_v62 }
 0x170   : > { %930 = vst.msk [vmem:[#allocation2 + $0x17] sm:$0xff] %vm927_vm11, %v836_v63  ;;  %1995 = vmatprep.mubr.msk.f32.mxu0 %vm197_vm0, %v1324_v0  ;;  %845 = vrot.lane.b32.xlu1 %v2340_v10, %s2175_s11 }
 0x171   : > { %1248 = vrot.lane.b32.xlu0 %v2417_v25, %s2178_s7  ;;  %1996 = vmatmul.mubr.msk.f32.vlgmr.msra.gmra.mrb[0].mxu0 %vm197_vm0, %v1325_v31 }
 0x172   : > { %v964_v32 = vpop.permute.xlu1 %963  ;;  %v868_v33 = vpop.permute.xlu0 %867 }
 0x173   : > { %v1340_v34 = vld [vmem:[#allocation2 + $0x80] sm:$0xff]  ;;  %v1341_v2 = vld [vmem:[#allocation2 + $0x88] sm:$0xff]  ;;  %1053 = vst.msk [vmem:[#allocation2 + $0x11] sm:$0xff] %vm1049_vm12, %v964_v32 }
 0x174   : > { %946 = vst.msk [vmem:[#allocation2 + $0x97] sm:$0xff] %vm927_vm11, %v868_v33  ;;  %2019 = vmatprep.mubr.msk.f32.mxu1 %vm197_vm0, %v1340_v34  ;;  %877 = vrot.lane.b32.xlu1 %v2430_v26, %s2175_s11 }
 0x175   : > { %847 = vrot.lane.b32.xlu0 %v2337_v9, %s2175_s11  ;;  %2020 = vmatmul.mubr.msk.f32.vlgmr.msra.gmra.mrb[0].mxu1 %vm197_vm0, %v1341_v2 }
 0x176   : > { %v996_v10 = vpop.permute.xlu1 %995  ;;  %v966_v35 = vpop.permute.xlu0 %965 }
 0x177   : > { %1069 = vst.msk [vmem:[#allocation2 + $0x91] sm:$0xff] %vm1049_vm12, %v996_v10 }
 0x178   : > { %1054 = vst.msk [vmem:[#allocation2 + $0x19] sm:$0x7f] %vm1051_vm13, %v966_v35  ;;  %975 = vrot.lane.b32.xlu1 %v2352_v12, %s2176_s12 }
 0x179   : > { %879 = vrot.lane.b32.xlu0 %v2417_v25, %s2175_s11 }
 0x17a   : > { %v1086_v4 = vpop.permute.xlu1 %1085  ;;  %v998_v36 = vpop.permute.xlu0 %997 }
 0x17b   : > { %1174 = vst.msk [vmem:[#allocation2 + $0x10] sm:$0xff] %vm1171_vm14, %v1086_v4 }
 0x17c   : > { %1070 = vst.msk [vmem:[#allocation2 + $0x99] sm:$0x7f] %vm1051_vm13, %v998_v36  ;;  %1007 = vrot.lane.b32.xlu1 %v2442_v28, %s2176_s12 }
 0x17d   : > { %977 = vrot.lane.b32.xlu0 %v2343_v11, %s2176_s12 }
 0x17e   : > { %v1118_v9 = vpop.permute.xlu1 %1117  ;;  %v1088_v26 = vpop.permute.xlu0 %1087 }
 0x17f   : > { %1190 = vst.msk [vmem:[#allocation2 + $0x90] sm:$0xff] %vm1171_vm14, %v1118_v9  ;;  %1175 = vst.msk [vmem:[#allocation2 + $0x18] sm:$0xff] %vm1171_vm14, %v1088_v26 }
 0x180   : > { %624 = vrot.lane.b32.xlu1 %v2433_v27, %s2173_s9 }
 0x181   : > { %1009 = vrot.lane.b32.xlu0 %v2433_v27, %s2176_s12 }
 0x182   : > { %v709_v25 = vpop.permute.xlu1 %708  ;;  %v1120_v37 = vpop.permute.xlu0 %1119 }
 0x183   : > { %801 = vst.msk [vmem:[#allocation2 + $0x20] sm:$0xff] %vm796_vm9, %v709_v25 }
 0x184   : > { %1191 = vst.msk [vmem:[#allocation2 + $0x98] sm:$0xff] %vm1171_vm14, %v1120_v37  ;;  %1099 = vrot.lane.b32.xlu1 %v2343_v11, %s2177_s13 }
 0x185   : > { %1097 = vrot.lane.b32.xlu0 %v2352_v12, %s2177_s13 }
 0x186   : > { %v741_v38 = vpop.permute.xlu1 %740  ;;  %v711_v39 = vpop.permute.xlu0 %710 }
 0x187   : > { %817 = vst.msk [vmem:[#allocation2 + $0xa0] sm:$0xff] %vm796_vm9, %v741_v38  ;;  %802 = vst.msk [vmem:[#allocation2 + $0x28] sm:$0xff] %vm796_vm9, %v711_v39 }
 0x188   : > { %1131 = vrot.lane.b32.xlu1 %v2433_v27, %s2177_s13 }
 0x189   : > { %1129 = vrot.lane.b32.xlu0 %v2442_v28, %s2177_s13 }
 0x18a   : > { %v1207_v6 = vpop.permute.xlu1 %1206  ;;  %v743_v40 = vpop.permute.xlu0 %742 }
 0x18b   : > { %1296 = vst.msk [vmem:[#allocation2 + $0xf] sm:$0xfe] %vm1292_vm15, %v1207_v6 }
 0x18c   : > { %818 = vst.msk [vmem:[#allocation2 + $0xa8] sm:$0xff] %vm796_vm9, %v743_v40  ;;  %722 = vrot.lane.b32.xlu1 %v2343_v11, %s2174_s10 }
 0x18d   : > { %720 = vrot.lane.b32.xlu0 %v2352_v12, %s2174_s10 }
 0x18e   : > { %v1239_v5 = vpop.permute.xlu1 %1238  ;;  %v1209_v22 = vpop.permute.xlu0 %1208 }
 0x18f   : > { %1312 = vst.msk [vmem:[#allocation2 + $0x8f] sm:$0xfe] %vm1292_vm15, %v1239_v5 }
 0x190   : > { %1297 = vst.msk [vmem:[#allocation2 + $0x17] sm:$0xff] %vm1294_vm1, %v1209_v22  ;;  %754 = vrot.lane.b32.xlu1 %v2433_v27, %s2174_s10 }
 0x191   : > { %752 = vrot.lane.b32.xlu0 %v2442_v28, %s2174_s10 }
 0x192   : > { %v838_v21 = vpop.permute.xlu1 %837  ;;  %v1241_v41 = vpop.permute.xlu0 %1240 }
 0x193   : > { %931 = vst.msk [vmem:[#allocation2 + $0x1f] sm:$0xfe] %vm925_vm10, %v838_v21 }
 0x194   : > { %1313 = vst.msk [vmem:[#allocation2 + $0x97] sm:$0xff] %vm1294_vm1, %v1241_v41  ;;  %1220 = vrot.lane.b32.xlu1 %v2343_v11, %s2178_s7 }
 0x195   : > { %1218 = vrot.lane.b32.xlu0 %v2352_v12, %s2178_s7 }
 0x196   : > { %v870_v42 = vpop.permute.xlu1 %869  ;;  %v840_v43 = vpop.permute.xlu0 %839 }
 0x197   : > { %v1326_v44 = vld [vmem:[#allocation2 + $0x10] sm:$0xff]  ;;  %v1327_v45 = vld [vmem:[#allocation2 + $0x18] sm:$0xff]  ;;  %947 = vst.msk [vmem:[#allocation2 + $0x9f] sm:$0xfe] %vm925_vm10, %v870_v42 }
 0x198   : > { %932 = vst.msk [vmem:[#allocation2 + $0x27] sm:$0xff] %vm927_vm11, %v840_v43  ;;  %1998 = vmatprep.mubr.msk.f32.mxu0 %vm197_vm0, %v1326_v44  ;;  %1252 = vrot.lane.b32.xlu1 %v2433_v27, %s2178_s7 }
 0x199   : > { %1250 = vrot.lane.b32.xlu0 %v2442_v28, %s2178_s7  ;;  %1999 = vmatmul.mubr.msk.f32.gmra.mrb[2].mxu0 %vm197_vm0, %v1327_v45 }
 0x19a   : > { %v968_v46 = vpop.permute.xlu1 %967  ;;  %v872_v47 = vpop.permute.xlu0 %871 }
 0x19b   : > { %v1342_v48 = vld [vmem:[#allocation2 + $0x90] sm:$0xff]  ;;  %v1343_v49 = vld [vmem:[#allocation2 + $0x98] sm:$0xff]  ;;  %1055 = vst.msk [vmem:[#allocation2 + $0x21] sm:$0xff] %vm1049_vm12, %v968_v46 }
 0x19c   : > { %948 = vst.msk [vmem:[#allocation2 + $0xa7] sm:$0xff] %vm927_vm11, %v872_v47  ;;  %2022 = vmatprep.mubr.msk.f32.mxu1 %vm197_vm0, %v1342_v48  ;;  %851 = vrot.lane.b32.xlu1 %v2343_v11, %s2175_s11 }
 0x19d   : > { %849 = vrot.lane.b32.xlu0 %v2352_v12, %s2175_s11  ;;  %2023 = vmatmul.mubr.msk.f32.gmra.mrb[2].mxu1 %vm197_vm0, %v1343_v49 }
 0x19e   : > { %v1000_v50 = vpop.permute.xlu1 %999  ;;  %v970_v51 = vpop.permute.xlu0 %969 }
 0x19f   : > { %1071 = vst.msk [vmem:[#allocation2 + $0xa1] sm:$0xff] %vm1049_vm12, %v1000_v50 }
 0x1a0   : > { %1056 = vst.msk [vmem:[#allocation2 + $0x29] sm:$0x7f] %vm1051_vm13, %v970_v51  ;;  %883 = vrot.lane.b32.xlu1 %v2433_v27, %s2175_s11 }
 0x1a1   : > { %881 = vrot.lane.b32.xlu0 %v2442_v28, %s2175_s11 }
 0x1a2   : > { %v1090_v52 = vpop.permute.xlu1 %1089  ;;  %v1002_v53 = vpop.permute.xlu0 %1001 }
 0x1a3   : > { %1176 = vst.msk [vmem:[#allocation2 + $0x20] sm:$0xff] %vm1171_vm14, %v1090_v52 }
 0x1a4   : > { %1072 = vst.msk [vmem:[#allocation2 + $0xa9] sm:$0x7f] %vm1051_vm13, %v1002_v53  ;;  %981 = vrot.lane.b32.xlu1 %v2355_v13, %s2176_s12 }
 0x1a5   : > { %979 = vrot.lane.b32.xlu0 %v2358_v14, %s2176_s12 }
 0x1a6   : > { %v1122_v11 = vpop.permute.xlu1 %1121  ;;  %v1092_v12 = vpop.permute.xlu0 %1091 }
 0x1a7   : > { %1192 = vst.msk [vmem:[#allocation2 + $0xa0] sm:$0xff] %vm1171_vm14, %v1122_v11  ;;  %1177 = vst.msk [vmem:[#allocation2 + $0x28] sm:$0xff] %vm1171_vm14, %v1092_v12 }
 0x1a8   : > { %1013 = vrot.lane.b32.xlu1 %v2445_v29, %s2176_s12 }
 0x1a9   : > { %1011 = vrot.lane.b32.xlu0 %v2448_v30, %s2176_s12 }
 0x1aa   : > { %v713_v27 = vpop.permute.xlu1 %712  ;;  %v1124_v28 = vpop.permute.xlu0 %1123 }
 0x1ab   : > { %803 = vst.msk [vmem:[#allocation2 + $0x30] sm:$0xff] %vm796_vm9, %v713_v27 }
 0x1ac   : > { %1193 = vst.msk [vmem:[#allocation2 + $0xa8] sm:$0xff] %vm1171_vm14, %v1124_v28  ;;  %628 = vrot.lane.b32.xlu1 %v2445_v29, %s2173_s9 }
 0x1ad   : > { %626 = vrot.lane.b32.xlu0 %v2448_v30, %s2173_s9 }
 0x1ae   : > { %v745_v54 = vpop.permute.xlu1 %744  ;;  %v715_v55 = vpop.permute.xlu0 %714 }
 0x1af   : > { %819 = vst.msk [vmem:[#allocation2 + $0xb0] sm:$0xff] %vm796_vm9, %v745_v54  ;;  %804 = vst.msk [vmem:[#allocation2 + $0x38] sm:$0xff] %vm796_vm9, %v715_v55 }
 0x1b0   : > { %1103 = vrot.lane.b32.xlu1 %v2355_v13, %s2177_s13 }
 0x1b1   : > { %1101 = vrot.lane.b32.xlu0 %v2358_v14, %s2177_s13 }
 0x1b2   : > { %v1211_v8 = vpop.permute.xlu1 %1210  ;;  %v747_v56 = vpop.permute.xlu0 %746 }
 0x1b3   : > { %1298 = vst.msk [vmem:[#allocation2 + $0x1f] sm:$0xfe] %vm1292_vm15, %v1211_v8 }
 0x1b4   : > { %820 = vst.msk [vmem:[#allocation2 + $0xb8] sm:$0xff] %vm796_vm9, %v747_v56  ;;  %1135 = vrot.lane.b32.xlu1 %v2445_v29, %s2177_s13 }
 0x1b5   : > { %1133 = vrot.lane.b32.xlu0 %v2448_v30, %s2177_s13 }
 0x1b6   : > { %v1243_v7 = vpop.permute.xlu1 %1242  ;;  %v1213_v24 = vpop.permute.xlu0 %1212 }
 0x1b7   : > { %1314 = vst.msk [vmem:[#allocation2 + $0x9f] sm:$0xfe] %vm1292_vm15, %v1243_v7 }
 0x1b8   : > { %1299 = vst.msk [vmem:[#allocation2 + $0x27] sm:$0xff] %vm1294_vm1, %v1213_v24  ;;  %726 = vrot.lane.b32.xlu1 %v2355_v13, %s2174_s10 }
 0x1b9   : > { %724 = vrot.lane.b32.xlu0 %v2358_v14, %s2174_s10 }
 0x1ba   : > { %v842_v23 = vpop.permute.xlu1 %841  ;;  %v1245_v57 = vpop.permute.xlu0 %1244 }
 0x1bb   : > { %933 = vst.msk [vmem:[#allocation2 + $0x2f] sm:$0xfe] %vm925_vm10, %v842_v23 }
 0x1bc   : > { %1315 = vst.msk [vmem:[#allocation2 + $0xa7] sm:$0xff] %vm1294_vm1, %v1245_v57  ;;  %758 = vrot.lane.b32.xlu1 %v2445_v29, %s2174_s10 }
 0x1bd   : > { %756 = vrot.lane.b32.xlu0 %v2448_v30, %s2174_s10 }
 0x1be   : > { %v874_v58 = vpop.permute.xlu1 %873  ;;  %v844_v59 = vpop.permute.xlu0 %843 }
 0x1bf   : > { %v1328_v1 = vld [vmem:[#allocation2 + $0x20] sm:$0xff]  ;;  %v1329_v60 = vld [vmem:[#allocation2 + $0x28] sm:$0xff]  ;;  %949 = vst.msk [vmem:[#allocation2 + $0xaf] sm:$0xfe] %vm925_vm10, %v874_v58 }
 0x1c0   : > { %934 = vst.msk [vmem:[#allocation2 + $0x37] sm:$0xff] %vm927_vm11, %v844_v59  ;;  %2001 = vmatprep.mubr.msk.f32.mxu0 %vm197_vm0, %v1328_v1  ;;  %1224 = vrot.lane.b32.xlu1 %v2355_v13, %s2178_s7 }
 0x1c1   : > { %1222 = vrot.lane.b32.xlu0 %v2358_v14, %s2178_s7  ;;  %2002 = vmatmul.mubr.msk.f32.gmra.mrb[4].mxu0 %vm197_vm0, %v1329_v60 }
 0x1c2   : > { %v972_v3 = vpop.permute.xlu1 %971  ;;  %v876_v20 = vpop.permute.xlu0 %875 }
 0x1c3   : > { %v1344_v19 = vld [vmem:[#allocation2 + $0xa0] sm:$0xff]  ;;  %v1345_v61 = vld [vmem:[#allocation2 + $0xa8] sm:$0xff]  ;;  %1057 = vst.msk [vmem:[#allocation2 + $0x31] sm:$0xff] %vm1049_vm12, %v972_v3 }
 0x1c4   : > { %950 = vst.msk [vmem:[#allocation2 + $0xb7] sm:$0xff] %vm927_vm11, %v876_v20  ;;  %2025 = vmatprep.mubr.msk.f32.mxu1 %vm197_vm0, %v1344_v19  ;;  %1256 = vrot.lane.b32.xlu1 %v2445_v29, %s2178_s7 }
 0x1c5   : > { %1254 = vrot.lane.b32.xlu0 %v2448_v30, %s2178_s7  ;;  %2026 = vmatmul.mubr.msk.f32.gmra.mrb[4].mxu1 %vm197_vm0, %v1345_v61 }
 0x1c6   : > { %v1004_v62 = vpop.permute.xlu1 %1003  ;;  %v974_v63 = vpop.permute.xlu0 %973 }
 0x1c7   : > { %1073 = vst.msk [vmem:[#allocation2 + $0xb1] sm:$0xff] %vm1049_vm12, %v1004_v62 }
 0x1c8   : > { %1058 = vst.msk [vmem:[#allocation2 + $0x39] sm:$0x7f] %vm1051_vm13, %v974_v63  ;;  %855 = vrot.lane.b32.xlu1 %v2355_v13, %s2175_s11  ;;  %v3078_v13 = vld [vmem:[%s2296_s6 + $0xf8] sm:$0xff] }
 0x1c9   : > { %853 = vrot.lane.b32.xlu0 %v2358_v14, %s2175_s11  ;;  %v3081_v14 = vld [vmem:[%s2296_s6 + $0xf0] sm:$0xff]  ;;  %s1693_s6 = sld [smem:[#allocation3]] }
 0x1ca   : > { %v1094_v0 = vpop.permute.xlu1 %1093  ;;  %v1006_v31 = vpop.permute.xlu0 %1005 }
 0x1cb   : > { %1178 = vst.msk [vmem:[#allocation2 + $0x30] sm:$0xff] %vm1171_vm14, %v1094_v0 }
 0x1cc   : > { %1074 = vst.msk [vmem:[#allocation2 + $0xb9] sm:$0x7f] %vm1051_vm13, %v1006_v31  ;;  %887 = vrot.lane.b32.xlu1 %v2445_v29, %s2175_s11 }
 0x1cd   : > { %885 = vrot.lane.b32.xlu0 %v2448_v30, %s2175_s11 }
 0x1ce   : > { %v1126_v32 = vpop.permute.xlu1 %1125  ;;  %v1096_v33 = vpop.permute.xlu0 %1095 }
 0x1cf   : > { %1194 = vst.msk [vmem:[#allocation2 + $0xb0] sm:$0xff] %vm1171_vm14, %v1126_v32  ;;  %1179 = vst.msk [vmem:[#allocation2 + $0x38] sm:$0xff] %vm1171_vm14, %v1096_v33 }
 0x1d0   : > { %985 = vrot.lane.b32.xlu1 %v2371_v15, %s2176_s12 }
 0x1d1   : > { %983 = vrot.lane.b32.xlu0 %v2374_v16, %s2176_s12 }
 0x1d2   : > { %v717_v29 = vpop.permute.xlu1 %716  ;;  %v1128_v34 = vpop.permute.xlu0 %1127 }
 0x1d3   : > { %805 = vst.msk [vmem:[#allocation2 + $0x40] sm:$0xff] %vm796_vm9, %v717_v29 }
 0x1d4   : > { %1195 = vst.msk [vmem:[#allocation2 + $0xb8] sm:$0xff] %vm1171_vm14, %v1128_v34  ;;  %1017 = vrot.lane.b32.xlu1 %v3078_v13, %s2176_s12 }
 0x1d5   : > { %1015 = vrot.lane.b32.xlu0 %v3081_v14, %s2176_s12 }
 0x1d6   : > { %v749_v30 = vpop.permute.xlu1 %748  ;;  %v719_v2 = vpop.permute.xlu0 %718 }
 0x1d7   : > { %821 = vst.msk [vmem:[#allocation2 + $0xc0] sm:$0xff] %vm796_vm9, %v749_v30  ;;  %806 = vst.msk [vmem:[#allocation2 + $0x48] sm:$0xff] %vm796_vm9, %v719_v2 }
 0x1d8   : > { %1107 = vrot.lane.b32.xlu1 %v2371_v15, %s2177_s13 }
 0x1d9   : > { %1105 = vrot.lane.b32.xlu0 %v2374_v16, %s2177_s13 }
 0x1da   : > { %v1215_v10 = vpop.permute.xlu1 %1214  ;;  %v751_v35 = vpop.permute.xlu0 %750 }
 0x1db   : > { %1300 = vst.msk [vmem:[#allocation2 + $0x2f] sm:$0xfe] %vm1292_vm15, %v1215_v10 }
 0x1dc   : > { %822 = vst.msk [vmem:[#allocation2 + $0xc8] sm:$0xff] %vm796_vm9, %v751_v35  ;;  %1139 = vrot.lane.b32.xlu1 %v3078_v13, %s2177_s13 }
 0x1dd   : > { %1137 = vrot.lane.b32.xlu0 %v3081_v14, %s2177_s13 }
 0x1de   : > { %v1247_v4 = vpop.permute.xlu1 %1246  ;;  %v1217_v36 = vpop.permute.xlu0 %1216 }
 0x1df   : > { %1316 = vst.msk [vmem:[#allocation2 + $0xaf] sm:$0xfe] %vm1292_vm15, %v1247_v4  ;;  %v3207_v4 = vld [vmem:[%s3434_s2] ss:$0 sm:$0xff] }
 0x1e0   : > { %1301 = vst.msk [vmem:[#allocation2 + $0x37] sm:$0xff] %vm1294_vm1, %v1217_v36  ;;  %730 = vrot.lane.b32.xlu1 %v2371_v15, %s2174_s10 }
 0x1e1   : > { %728 = vrot.lane.b32.xlu0 %v2374_v16, %s2174_s10 }
 0x1e2   : > { %v846_v9 = vpop.permute.xlu1 %845 }
 0x1e3   : > { %v1249_v26 = vpop.permute.xlu0 %1248  ;;  %935 = vst.msk [vmem:[#allocation2 + $0x3f] sm:$0xfe] %vm925_vm10, %v846_v9  ;;  %v3213_v9 = vstv %s1693_s6 }
 0x1e4   : > { %1317 = vst.msk [vmem:[#allocation2 + $0xb7] sm:$0xff] %vm1294_vm1, %v1249_v26  ;;  %1228 = vrot.lane.b32.xlu1 %v2371_v15, %s2178_s7 }
 0x1e5   : > { %1226 = vrot.lane.b32.xlu0 %v2374_v16, %s2178_s7 }
 0x1e6   : > { %v878_v25 = vpop.permute.xlu1 %877 }
 0x1e7   : > { %v848_v37 = vpop.permute.xlu0 %847  ;;  %v1330_v38 = vld [vmem:[#allocation2 + $0x30] sm:$0xff]  ;;  %v1331_v39 = vld [vmem:[#allocation2 + $0x38] sm:$0xff]  ;;  %951 = vst.msk [vmem:[#allocation2 + $0xbf] sm:$0xfe] %vm925_vm10, %v878_v25 }
 0x1e8   : > { %936 = vst.msk [vmem:[#allocation2 + $0x47] sm:$0xff] %vm927_vm11, %v848_v37  ;;  %2004 = vmatprep.mubr.msk.f32.mxu0 %vm197_vm0, %v1330_v38  ;;  %1260 = vrot.lane.b32.xlu1 %v3078_v13, %s2178_s7 }
 0x1e9   : > { %1258 = vrot.lane.b32.xlu0 %v3081_v14, %s2178_s7  ;;  %2005 = vmatmul.mubr.msk.f32.gmra.mrb[6].mxu0 %vm197_vm0, %v1331_v39 }
 0x1ea   : > { %v976_v6 = vpop.permute.xlu1 %975 }
 0x1eb   : > { %v880_v40 = vpop.permute.xlu0 %879  ;;  %v1346_v5 = vld [vmem:[#allocation2 + $0xb0] sm:$0xff]  ;;  %v1347_v22 = vld [vmem:[#allocation2 + $0xb8] sm:$0xff]  ;;  %1059 = vst.msk [vmem:[#allocation2 + $0x41] sm:$0xff] %vm1049_vm12, %v976_v6 }
 0x1ec   : > { %952 = vst.msk [vmem:[#allocation2 + $0xc7] sm:$0xff] %vm927_vm11, %v880_v40  ;;  %2028 = vmatprep.mubr.msk.f32.mxu1 %vm197_vm0, %v1346_v5  ;;  %859 = vrot.lane.b32.xlu1 %v2371_v15, %s2175_s11 }
 0x1ed   : > { %857 = vrot.lane.b32.xlu0 %v2374_v16, %s2175_s11  ;;  %2029 = vmatmul.mubr.msk.f32.gmra.mrb[6].mxu1 %vm197_vm0, %v1347_v22 }
 0x1ee   : > { %v1008_v21 = vpop.permute.xlu1 %1007 }
 0x1ef   : > { %v978_v41 = vpop.permute.xlu0 %977  ;;  %1075 = vst.msk [vmem:[#allocation2 + $0xc1] sm:$0xff] %vm1049_vm12, %v1008_v21 }
 0x1f0   : > { %1060 = vst.msk [vmem:[#allocation2 + $0x49] sm:$0x7f] %vm1051_vm13, %v978_v41  ;;  %632 = vrot.lane.b32.xlu1 %v3078_v13, %s2173_s9 }
 0x1f1   : > { %630 = vrot.lane.b32.xlu0 %v3081_v14, %s2173_s9  ;;  %s189_s9 = sand.u32 1, %s2160_s18  }
 0x1f2   : > { %v625_v42 = vpop.permute.xlu1 %624  ;;  %s3390_s23 = scalar_lea.sflag [#allocation5], %s189_s9 }
 0x1f3   : > { %v1010_v43 = vpop.permute.xlu0 %1009  ;;  %695 = vst.msk [vmem:[#allocation2 + $0xd9] sm:$0x7f] %vm668_vm7, %v625_v42 }
 0x1f4   : > { %1076 = vst.msk [vmem:[#allocation2 + $0xc9] sm:$0x7f] %vm1051_vm13, %v1010_v43  ;;  %989 = vrot.lane.b32.xlu1 %v2383_v17, %s2176_s12 }
 0x1f5   : > { %987 = vrot.lane.b32.xlu0 %v2386_v18, %s2176_s12  ;;  %s1904_s12 = sshll.u32 %s189_s9, 8 }
 0x1f6   : > { %v1100_v15 = vpop.permute.xlu1 %1099 }
 0x1f7   : > { %v1098_v16 = vpop.permute.xlu0 %1097  ;;  %1181 = vst.msk [vmem:[#allocation2 + $0x48] sm:$0xff] %vm1171_vm14, %v1100_v15 }
 0x1f8   : > { %1180 = vst.msk [vmem:[#allocation2 + $0x40] sm:$0xff] %vm1171_vm14, %v1098_v16  ;;  %762 = vrot.lane.b32.xlu1 %v3078_v13, %s2174_s10 }
 0x1f9   : > { %760 = vrot.lane.b32.xlu0 %v3081_v14, %s2174_s10 }
 0x1fa   : > { %v1132_v44 = vpop.permute.xlu1 %1131 }
 0x1fb   : > { %v1130_v45 = vpop.permute.xlu0 %1129  ;;  %1197 = vst.msk [vmem:[#allocation2 + $0xc8] sm:$0xff] %vm1171_vm14, %v1132_v44 }
 0x1fc   : > { %1196 = vst.msk [vmem:[#allocation2 + $0xc0] sm:$0xff] %vm1171_vm14, %v1130_v45  ;;  %1111 = vrot.lane.b32.xlu1 %v2383_v17, %s2177_s13 }
 0x1fd   : > { %1109 = vrot.lane.b32.xlu0 %v2386_v18, %s2177_s13  ;;  %s3222_s13 = scalar_lea.vmem [#allocation4], %s1904_s12 }
 0x1fe   : > { %v723_v46 = vpop.permute.xlu1 %722  ;;  %s1838_s15 = sshll.u32 %s3222_s13, 4  ;;  %s3382_s15 = int_to_ptr.vmem [resolvable:$true] %s1838_s15 }
 0x1ff   : > { %v721_v47 = vpop.permute.xlu0 %720  ;;  %808 = vst.msk [vmem:[#allocation2 + $0x58] sm:$0xff] %vm796_vm9, %v723_v46  ;;  %s2106_s24 = scalar_lea.vmem %s3382_s15, 4096  ;;  %p2113_p0 = scmp.lt.s32.totalorder %s3382_s15, %s2111_s29 }
 0x200   : > { %807 = vst.msk [vmem:[#allocation2 + $0x50] sm:$0xff] %vm796_vm9, %v721_v47  ;;  %891 = vrot.lane.b32.xlu1 %v3078_v13, %s2175_s11  ;;  %p2107_p11 = scmp.ne.s32.totalorder %s3382_s15, %s2106_s24  ;;  %p2114_p1 = scmp.lt.s32.totalorder %s2112_s30, %s2106_s24 }
 0x201   : > { %889 = vrot.lane.b32.xlu0 %v3081_v14, %s2175_s11 }
 0x202   : > { %v755_v48 = vpop.permute.xlu1 %754  ;;  %p2108_p12 = pnand %p2107_p11, %p2247_p5  ;;  %p2115_p2 = por %p2114_p1, %p2113_p0 }
 0x203   : > { %v753_v49 = vpop.permute.xlu0 %752  ;;  %824 = vst.msk [vmem:[#allocation2 + $0xd8] sm:$0xff] %vm796_vm9, %v755_v48 }
 0x204   : > { %823 = vst.msk [vmem:[#allocation2 + $0xd0] sm:$0xff] %vm796_vm9, %v753_v49  ;;  %1232 = vrot.lane.b32.xlu1 %v2383_v17, %s2178_s7  ;;  %p2109_p13 = pneg %p2108_p12 }
 0x205   : > { %1230 = vrot.lane.b32.xlu0 %v2386_v18, %s2178_s7 }
 0x206   : > { %v1221_v50 = vpop.permute.xlu1 %1220  ;;  %p2116_p3 = pnand %p2115_p2, %p2109_p13 }
 0x207   : > { %v1219_v51 = vpop.permute.xlu0 %1218  ;;  %1303 = vst.msk [vmem:[#allocation2 + $0x47] sm:$0xff] %vm1294_vm1, %v1221_v50 }
 0x208   : > { %1302 = vst.msk [vmem:[#allocation2 + $0x3f] sm:$0xfe] %vm1292_vm15, %v1219_v51 }
 0x20a   : > { %v1253_v52 = vpop.permute.xlu1 %1252 }
 0x20b   : > { %v1251_v53 = vpop.permute.xlu0 %1250  ;;  %1319 = vst.msk [vmem:[#allocation2 + $0xc7] sm:$0xff] %vm1294_vm1, %v1253_v52 }
 0x20c   : > { %1318 = vst.msk [vmem:[#allocation2 + $0xbf] sm:$0xfe] %vm1292_vm15, %v1251_v53 }
 0x20e   : > { %v852_v11 = vpop.permute.xlu1 %851  ;;  %v1333_v28 = vld [vmem:[#allocation2 + $0x48] sm:$0xff] }
 0x20f   : > { %v850_v12 = vpop.permute.xlu0 %849  ;;  %v1332_v27 = vld [vmem:[#allocation2 + $0x40] sm:$0xff]  ;;  %938 = vst.msk [vmem:[#allocation2 + $0x57] sm:$0xff] %vm927_vm11, %v852_v11 }
 0x210   : > { %937 = vst.msk [vmem:[#allocation2 + $0x4f] sm:$0xfe] %vm925_vm10, %v850_v12  ;;  %2007 = vmatprep.mubr.msk.f32.mxu0 %vm197_vm0, %v1332_v27 }
 0x211   : > { %2008 = vmatmul.mubr.msk.f32.gmra.mrb[8].mxu0 %vm197_vm0, %v1333_v28 }
 0x212   : > { %v884_v17 = vpop.permute.xlu1 %883  ;;  %v1349_v55 = vld [vmem:[#allocation2 + $0xc8] sm:$0xff] }
 0x213   : > { %v882_v18 = vpop.permute.xlu0 %881  ;;  %v1348_v54 = vld [vmem:[#allocation2 + $0xc0] sm:$0xff]  ;;  %954 = vst.msk [vmem:[#allocation2 + $0xd7] sm:$0xff] %vm927_vm11, %v884_v17 }
 0x214   : > { %953 = vst.msk [vmem:[#allocation2 + $0xcf] sm:$0xfe] %vm925_vm10, %v882_v18  ;;  %2031 = vmatprep.mubr.msk.f32.mxu1 %vm197_vm0, %v1348_v54 }
 0x215   : > { %2032 = vmatmul.mubr.msk.f32.gmra.mrb[8].mxu1 %vm197_vm0, %v1349_v55 }
 0x216   : > { %v982_v8 = vpop.permute.xlu1 %981 }
 0x217   : > { %v980_v56 = vpop.permute.xlu0 %979  ;;  %1062 = vst.msk [vmem:[#allocation2 + $0x59] sm:$0x7f] %vm1051_vm13, %v982_v8 }
 0x218   : > { %1061 = vst.msk [vmem:[#allocation2 + $0x51] sm:$0xff] %vm1049_vm12, %v980_v56 }
 0x21a   : > { %v1014_v7 = vpop.permute.xlu1 %1013 }
 0x21b   : > { %v1012_v24 = vpop.permute.xlu0 %1011  ;;  %1078 = vst.msk [vmem:[#allocation2 + $0xd9] sm:$0x7f] %vm1051_vm13, %v1014_v7 }
 0x21c   : > { %1077 = vst.msk [vmem:[#allocation2 + $0xd1] sm:$0xff] %vm1049_vm12, %v1012_v24 }
 0x21e   : > { %v629_v23 = vpop.permute.xlu1 %628 }
 0x21f   : > { %v627_v57 = vpop.permute.xlu0 %626  ;;  %697 = vst.msk [vmem:[#allocation2 + $0xe9] sm:$0x7f] %vm668_vm7, %v629_v23 }
 0x220   : > { %696 = vst.msk [vmem:[#allocation2 + $0xe1] sm:$0xff] %vm666_vm8, %v627_v57 }
 0x222   : > { %v1104_v58 = vpop.permute.xlu1 %1103 }
 0x223   : > { %v1102_v59 = vpop.permute.xlu0 %1101  ;;  %1183 = vst.msk [vmem:[#allocation2 + $0x58] sm:$0xff] %vm1171_vm14, %v1104_v58 }
 0x224   : > { %1182 = vst.msk [vmem:[#allocation2 + $0x50] sm:$0xff] %vm1171_vm14, %v1102_v59 }
 0x226   : > { %v1136_v1 = vpop.permute.xlu1 %1135 }
 0x227   : > { %v1134_v60 = vpop.permute.xlu0 %1133  ;;  %1199 = vst.msk [vmem:[#allocation2 + $0xd8] sm:$0xff] %vm1171_vm14, %v1136_v1 }
 0x228   : > { %1198 = vst.msk [vmem:[#allocation2 + $0xd0] sm:$0xff] %vm1171_vm14, %v1134_v60 }
 0x22a   : > { %v727_v3 = vpop.permute.xlu1 %726 }
 0x22b   : > { %v725_v20 = vpop.permute.xlu0 %724  ;;  %810 = vst.msk [vmem:[#allocation2 + $0x68] sm:$0xff] %vm796_vm9, %v727_v3 }
 0x22c   : > { %809 = vst.msk [vmem:[#allocation2 + $0x60] sm:$0xff] %vm796_vm9, %v725_v20 }
 0x22e   : > { %v759_v19 = vpop.permute.xlu1 %758 }
 0x22f   : > { %v757_v61 = vpop.permute.xlu0 %756  ;;  %826 = vst.msk [vmem:[#allocation2 + $0xe8] sm:$0xff] %vm796_vm9, %v759_v19 }
 0x230   : > { %825 = vst.msk [vmem:[#allocation2 + $0xe0] sm:$0xff] %vm796_vm9, %v757_v61 }
 0x232   : > { %v1225_v62 = vpop.permute.xlu1 %1224 }
 0x233   : > { %v1223_v63 = vpop.permute.xlu0 %1222  ;;  %1305 = vst.msk [vmem:[#allocation2 + $0x57] sm:$0xff] %vm1294_vm1, %v1225_v62 }
 0x234   : > { %1304 = vst.msk [vmem:[#allocation2 + $0x4f] sm:$0xfe] %vm1292_vm15, %v1223_v63 }
 0x236   : > { %v1257_v0 = vpop.permute.xlu1 %1256 }
 0x237   : > { %v1255_v31 = vpop.permute.xlu0 %1254  ;;  %1321 = vst.msk [vmem:[#allocation2 + $0xd7] sm:$0xff] %vm1294_vm1, %v1257_v0 }
 0x238   : > { %1320 = vst.msk [vmem:[#allocation2 + $0xcf] sm:$0xfe] %vm1292_vm15, %v1255_v31 }
 0x23a   : > { %v856_v32 = vpop.permute.xlu1 %855  ;;  %v1335_v14 = vld [vmem:[#allocation2 + $0x58] sm:$0xff] }
 0x23b   : > { %v854_v33 = vpop.permute.xlu0 %853  ;;  %v1334_v13 = vld [vmem:[#allocation2 + $0x50] sm:$0xff]  ;;  %940 = vst.msk [vmem:[#allocation2 + $0x67] sm:$0xff] %vm927_vm11, %v856_v32 }
 0x23c   : > { %939 = vst.msk [vmem:[#allocation2 + $0x5f] sm:$0xfe] %vm925_vm10, %v854_v33  ;;  %2010 = vmatprep.mubr.msk.f32.mxu0 %vm197_vm0, %v1334_v13 }
 0x23d   : > { %2011 = vmatmul.mubr.msk.f32.gmra.mrb[10].mxu0 %vm197_vm0, %v1335_v14 }
 0x23e   : > { %v888_v29 = vpop.permute.xlu1 %887  ;;  %v1351_v2 = vld [vmem:[#allocation2 + $0xd8] sm:$0xff] }
 0x23f   : > { %v886_v34 = vpop.permute.xlu0 %885  ;;  %v1350_v30 = vld [vmem:[#allocation2 + $0xd0] sm:$0xff]  ;;  %956 = vst.msk [vmem:[#allocation2 + $0xe7] sm:$0xff] %vm927_vm11, %v888_v29 }
 0x240   : > { %955 = vst.msk [vmem:[#allocation2 + $0xdf] sm:$0xfe] %vm925_vm10, %v886_v34  ;;  %2034 = vmatprep.mubr.msk.f32.mxu1 %vm197_vm0, %v1350_v30 }
 0x241   : > { %2035 = vmatmul.mubr.msk.f32.gmra.mrb[10].mxu1 %vm197_vm0, %v1351_v2 }
 0x242   : > { %v986_v10 = vpop.permute.xlu1 %985 }
 0x243   : > { %v984_v35 = vpop.permute.xlu0 %983  ;;  %1064 = vst.msk [vmem:[#allocation2 + $0x69] sm:$0x7f] %vm1051_vm13, %v986_v10 }
 0x244   : > { %1063 = vst.msk [vmem:[#allocation2 + $0x61] sm:$0xff] %vm1049_vm12, %v984_v35  ;;  %v1997_v36 = vpop.f32.mrb[0].mxu0 }
 0x245   : > { %v1540_v26 = vadd.f32 %v1997_v36, %v3207_v4  ;;  %v1534_v25 = vpop.f32.mrb[1].mxu0 }
 0x246   : > { %v1535_v37 = vadd.f32 %v3207_v4, %v1534_v25  ;;  %v1018_v38 = vpop.permute.xlu1 %1017 }
 0x247   : > { %v1016_v39 = vpop.permute.xlu0 %1015  ;;  %vm1695_vm2 = vcmp.ge.f32.partialorder %v1540_v26, 0.0  ;;  %v1728_v6 = vmul.f32 %v3213_v9, %v1540_v26  ;;  %1080 = vst.msk [vmem:[#allocation2 + $0xe9] sm:$0x7f] %vm1051_vm13, %v1018_v38 }
 0x248   : > { %1079 = vst.msk [vmem:[#allocation2 + $0xe1] sm:$0xff] %vm1049_vm12, %v1016_v39  ;;  %vm1694_vm4 = vcmp.ge.f32.partialorder %v1535_v37, 0.0  ;;  %v1727_v40 = vmul.f32 %v3213_v9, %v1535_v37  ;;  %v2021_v5 = vpop.f32.mrb[0].mxu1 }
 0x249   : > { %v1760_v22 = vsel %vm1695_vm2, %v1540_v26, %v1728_v6  ;;  %v1620_v21 = vadd.f32 %v2021_v5, %v3207_v4  ;;  %v1614_v41 = vpop.f32.mrb[1].mxu1 }
 0x24a   : > { %1793 = vst.msk [vmem:[%s3222_s13 + $0x8] sm:$0xff] %vm1791_vm3, %v1760_v22  ;;  %v1759_v42 = vsel %vm1694_vm4, %v1535_v37, %v1727_v40  ;;  %v1615_v43 = vadd.f32 %v3207_v4, %v1614_v41  ;;  %v1108_v15 = vpop.permute.xlu1 %1107 }
 0x24b   : > { %v1106_v16 = vpop.permute.xlu0 %1105  ;;  %1792 = vst.msk [vmem:[%s3222_s13] sm:$0xff] %vm1791_vm3, %v1759_v42  ;;  %vm1711_vm5 = vcmp.ge.f32.partialorder %v1620_v21, 0.0  ;;  %v1744_v44 = vmul.f32 %v3213_v9, %v1620_v21 }
 0x24c   : > { %1185 = vst.msk [vmem:[#allocation2 + $0x68] sm:$0xff] %vm1171_vm14, %v1108_v15  ;;  %1184 = vst.msk [vmem:[#allocation2 + $0x60] sm:$0xff] %vm1171_vm14, %v1106_v16  ;;  %vm1710_vm6 = vcmp.ge.f32.partialorder %v1615_v43, 0.0  ;;  %v1743_v45 = vmul.f32 %v3213_v9, %v1615_v43 }
 0x24d   : > { %v1776_v46 = vsel %vm1711_vm5, %v1620_v21, %v1744_v44 }
 0x24e   : > { %1809 = vst.msk [vmem:[%s3222_s13 + $0x88] sm:$0xff] %vm1791_vm3, %v1776_v46  ;;  %v1775_v47 = vsel %vm1710_vm6, %v1615_v43, %v1743_v45  ;;  %v1140_v48 = vpop.permute.xlu1 %1139 }
 0x24f   : > { %v1138_v49 = vpop.permute.xlu0 %1137  ;;  %1808 = vst.msk [vmem:[%s3222_s13 + $0x80] sm:$0xff] %vm1791_vm3, %v1775_v47 }
 0x250   : > { %1201 = vst.msk [vmem:[#allocation2 + $0xe8] sm:$0xff] %vm1171_vm14, %v1140_v48  ;;  %1200 = vst.msk [vmem:[#allocation2 + $0xe0] sm:$0xff] %vm1171_vm14, %v1138_v49 }
 0x252   : > { %v731_v50 = vpop.permute.xlu1 %730 }
 0x253   : > { %v729_v51 = vpop.permute.xlu0 %728  ;;  %812 = vst.msk [vmem:[#allocation2 + $0x78] sm:$0xff] %vm796_vm9, %v731_v50 }
 0x254   : > { %811 = vst.msk [vmem:[#allocation2 + $0x70] sm:$0xff] %vm796_vm9, %v729_v51 }
 0x256   : > { %v1229_v52 = vpop.permute.xlu1 %1228 }
 0x257   : > { %v1227_v53 = vpop.permute.xlu0 %1226  ;;  %1307 = vst.msk [vmem:[#allocation2 + $0x67] sm:$0xff] %vm1294_vm1, %v1229_v52 }
 0x258   : > { %1306 = vst.msk [vmem:[#allocation2 + $0x5f] sm:$0xfe] %vm1292_vm15, %v1227_v53 }
 0x25a   : > { %v1261_v11 = vpop.permute.xlu1 %1260 }
 0x25b   : > { %v1259_v12 = vpop.permute.xlu0 %1258  ;;  %1323 = vst.msk [vmem:[#allocation2 + $0xe7] sm:$0xff] %vm1294_vm1, %v1261_v11 }
 0x25c   : > { %1322 = vst.msk [vmem:[#allocation2 + $0xdf] sm:$0xfe] %vm1292_vm15, %v1259_v12 }
 0x25e   : > { %v860_v27 = vpop.permute.xlu1 %859  ;;  %v1337_v18 = vld [vmem:[#allocation2 + $0x68] sm:$0xff] }
 0x25f   : > { %v858_v28 = vpop.permute.xlu0 %857  ;;  %v1336_v17 = vld [vmem:[#allocation2 + $0x60] sm:$0xff]  ;;  %942 = vst.msk [vmem:[#allocation2 + $0x77] sm:$0xff] %vm927_vm11, %v860_v27 }
 0x260   : > { %941 = vst.msk [vmem:[#allocation2 + $0x6f] sm:$0xfe] %vm925_vm10, %v858_v28  ;;  %2013 = vmatprep.mubr.msk.f32.mxu0 %vm197_vm0, %v1336_v17 }
 0x261   : > { %2014 = vmatmul.mubr.msk.f32.gmra.mrb[12].mxu0 %vm197_vm0, %v1337_v18 }
 0x262   : > { %v633_v54 = vpop.permute.xlu1 %632  ;;  %v1353_v56 = vld [vmem:[#allocation2 + $0xe8] sm:$0xff] }
 0x263   : > { %v631_v55 = vpop.permute.xlu0 %630  ;;  %v1352_v8 = vld [vmem:[#allocation2 + $0xe0] sm:$0xff]  ;;  %699 = vst.msk [vmem:[#allocation2 + $0xf9] sm:$0x7f] %vm668_vm7, %v633_v54 }
 0x264   : > { %698 = vst.msk [vmem:[#allocation2 + $0xf1] sm:$0xff] %vm666_vm8, %v631_v55  ;;  %2037 = vmatprep.mubr.msk.f32.mxu1 %vm197_vm0, %v1352_v8 }
 0x265   : > { %2038 = vmatmul.mubr.msk.f32.gmra.mrb[12].mxu1 %vm197_vm0, %v1353_v56 }
 0x266   : > { %v990_v7 = vpop.permute.xlu1 %989 }
 0x267   : > { %v988_v24 = vpop.permute.xlu0 %987  ;;  %1066 = vst.msk [vmem:[#allocation2 + $0x79] sm:$0x7f] %vm1051_vm13, %v990_v7 }
 0x268   : > { %1065 = vst.msk [vmem:[#allocation2 + $0x71] sm:$0xff] %vm1049_vm12, %v988_v24 }
 0x26a   : > { %v763_v23 = vpop.permute.xlu1 %762 }
 0x26b   : > { %v761_v57 = vpop.permute.xlu0 %760  ;;  %828 = vst.msk [vmem:[#allocation2 + $0xf8] sm:$0xff] %vm796_vm9, %v763_v23 }
 0x26c   : > { %827 = vst.msk [vmem:[#allocation2 + $0xf0] sm:$0xff] %vm796_vm9, %v761_v57  ;;  %v2000_v58 = vpop.f32.mrb[2].mxu0 }
 0x26d   : > { %v1550_v59 = vadd.f32 %v2000_v58, %v3207_v4  ;;  %v1544_v1 = vpop.f32.mrb[3].mxu0 }
 0x26e   : > { %v1545_v60 = vadd.f32 %v3207_v4, %v1544_v1  ;;  %v1112_v3 = vpop.permute.xlu1 %1111 }
 0x26f   : > { %v1110_v20 = vpop.permute.xlu0 %1109  ;;  %vm1697_vm7 = vcmp.ge.f32.partialorder %v1550_v59, 0.0  ;;  %v1730_v19 = vmul.f32 %v3213_v9, %v1550_v59  ;;  %1187 = vst.msk [vmem:[#allocation2 + $0x78] sm:$0xff] %vm1171_vm14, %v1112_v3 }
 0x270   : > { %1186 = vst.msk [vmem:[#allocation2 + $0x70] sm:$0xff] %vm1171_vm14, %v1110_v20  ;;  %vm1696_vm8 = vcmp.ge.f32.partialorder %v1545_v60, 0.0  ;;  %v1729_v61 = vmul.f32 %v3213_v9, %v1545_v60  ;;  %v2024_v62 = vpop.f32.mrb[2].mxu1 }
 0x271   : > { %v1762_v63 = vsel %vm1697_vm7, %v1550_v59, %v1730_v19  ;;  %v1630_v0 = vadd.f32 %v2024_v62, %v3207_v4  ;;  %v1624_v31 = vpop.f32.mrb[3].mxu1 }
 0x272   : > { %1795 = vst.msk [vmem:[%s3222_s13 + $0x18] sm:$0xff] %vm1791_vm3, %v1762_v63  ;;  %v1761_v32 = vsel %vm1696_vm8, %v1545_v60, %v1729_v61  ;;  %v1625_v33 = vadd.f32 %v3207_v4, %v1624_v31  ;;  %v892_v13 = vpop.permute.xlu1 %891 }
 0x273   : > { %v890_v14 = vpop.permute.xlu0 %889  ;;  %1794 = vst.msk [vmem:[%s3222_s13 + $0x10] sm:$0xff] %vm1791_vm3, %v1761_v32  ;;  %vm1713_vm9 = vcmp.ge.f32.partialorder %v1630_v0, 0.0  ;;  %v1746_v29 = vmul.f32 %v3213_v9, %v1630_v0 }
 0x274   : > { %958 = vst.msk [vmem:[#allocation2 + $0xf7] sm:$0xff] %vm927_vm11, %v892_v13  ;;  %vm1712_vm12 = vcmp.ge.f32.partialorder %v1625_v33, 0.0  ;;  %v1745_v34 = vmul.f32 %v3213_v9, %v1625_v33 }
 0x275   : > { %957 = vst.msk [vmem:[#allocation2 + $0xef] sm:$0xfe] %vm925_vm10, %v890_v14  ;;  %v1778_v30 = vsel %vm1713_vm9, %v1630_v0, %v1746_v29 }
 0x276   : > { %1811 = vst.msk [vmem:[%s3222_s13 + $0x98] sm:$0xff] %vm1791_vm3, %v1778_v30  ;;  %v1777_v2 = vsel %vm1712_vm12, %v1625_v33, %v1745_v34  ;;  %v1233_v10 = vpop.permute.xlu1 %1232 }
 0x277   : > { %v1231_v35 = vpop.permute.xlu0 %1230  ;;  %1810 = vst.msk [vmem:[%s3222_s13 + $0x90] sm:$0xff] %vm1791_vm3, %v1777_v2 }
 0x278   : > { %1309 = vst.msk [vmem:[#allocation2 + $0x77] sm:$0xff] %vm1294_vm1, %v1233_v10 }
 0x279   : > { %1308 = vst.msk [vmem:[#allocation2 + $0x6f] sm:$0xfe] %vm1292_vm15, %v1231_v35 }
 0x27b   : > { %v1355_v26 = vld [vmem:[#allocation2 + $0xf8] sm:$0xff] }
 0x27c   : > { %v1354_v36 = vld [vmem:[#allocation2 + $0xf0] sm:$0xff] }
 0x27d   : > { %2040 = vmatprep.mubr.msk.f32.mxu1 %vm197_vm0, %v1354_v36 }
 0x27e   : > { %2041 = vmatmul.mubr.msk.f32.gmra.mrb[14].mxu1 %vm197_vm0, %v1355_v26 }
 0x27f   : > { %v1339_v37 = vld [vmem:[#allocation2 + $0x78] sm:$0xff] }
 0x280   : > { %v1338_v25 = vld [vmem:[#allocation2 + $0x70] sm:$0xff] }
 0x281   : > { %2016 = vmatprep.mubr.msk.f32.mxu0 %vm197_vm0, %v1338_v25 }
 0x282   : > { %2017 = vmatmul.mubr.msk.f32.gmra.mrb[14].mxu0 %vm197_vm0, %v1339_v37 }
 0x294   : > { %v2003_v38 = vpop.f32.mrb[4].mxu0 }
 0x295   : > { %v1560_v39 = vadd.f32 %v2003_v38, %v3207_v4  ;;  %v1554_v6 = vpop.f32.mrb[5].mxu0 }
 0x296   : > { %v1555_v40 = vadd.f32 %v3207_v4, %v1554_v6 }
 0x297   : > { %vm1699_vm10 = vcmp.ge.f32.partialorder %v1560_v39, 0.0  ;;  %v1732_v5 = vmul.f32 %v3213_v9, %v1560_v39 }
 0x298   : > { %vm1698_vm11 = vcmp.ge.f32.partialorder %v1555_v40, 0.0  ;;  %v1731_v22 = vmul.f32 %v3213_v9, %v1555_v40  ;;  %v2027_v21 = vpop.f32.mrb[4].mxu1 }
 0x299   : > { %v1764_v41 = vsel %vm1699_vm10, %v1560_v39, %v1732_v5  ;;  %v1640_v42 = vadd.f32 %v2027_v21, %v3207_v4  ;;  %v1634_v43 = vpop.f32.mrb[5].mxu1 }
 0x29a   : > { %1797 = vst.msk [vmem:[%s3222_s13 + $0x28] sm:$0xff] %vm1791_vm3, %v1764_v41  ;;  %v1763_v15 = vsel %vm1698_vm11, %v1555_v40, %v1731_v22  ;;  %v1635_v16 = vadd.f32 %v3207_v4, %v1634_v43 }
 0x29b   : > { %1796 = vst.msk [vmem:[%s3222_s13 + $0x20] sm:$0xff] %vm1791_vm3, %v1763_v15  ;;  %vm1715_vm0 = vcmp.ge.f32.partialorder %v1640_v42, 0.0  ;;  %v1748_v44 = vmul.f32 %v3213_v9, %v1640_v42 }
 0x29c   : > { %vm1714_vm13 = vcmp.ge.f32.partialorder %v1635_v16, 0.0  ;;  %v1747_v45 = vmul.f32 %v3213_v9, %v1635_v16 }
 0x29d   : > { %v1780_v46 = vsel %vm1715_vm0, %v1640_v42, %v1748_v44 }
 0x29e   : > { %1813 = vst.msk [vmem:[%s3222_s13 + $0xa8] sm:$0xff] %vm1791_vm3, %v1780_v46  ;;  %v1779_v47 = vsel %vm1714_vm13, %v1635_v16, %v1747_v45 }
 0x29f   : > { %1812 = vst.msk [vmem:[%s3222_s13 + $0xa0] sm:$0xff] %vm1791_vm3, %v1779_v47 }
 0x2bc   : > { %v2006_v48 = vpop.f32.mrb[6].mxu0 }
 0x2bd   : > { %v1570_v49 = vadd.f32 %v2006_v48, %v3207_v4  ;;  %v1564_v50 = vpop.f32.mrb[7].mxu0 }
 0x2be   : > { %v1565_v51 = vadd.f32 %v3207_v4, %v1564_v50 }
 0x2bf   : > { %vm1701_vm14 = vcmp.ge.f32.partialorder %v1570_v49, 0.0  ;;  %v1734_v52 = vmul.f32 %v3213_v9, %v1570_v49 }
 0x2c0   : > { %vm1700_vm15 = vcmp.ge.f32.partialorder %v1565_v51, 0.0  ;;  %v1733_v53 = vmul.f32 %v3213_v9, %v1565_v51  ;;  %v2030_v11 = vpop.f32.mrb[6].mxu1 }
 0x2c1   : > { %v1766_v12 = vsel %vm1701_vm14, %v1570_v49, %v1734_v52  ;;  %v1650_v27 = vadd.f32 %v2030_v11, %v3207_v4  ;;  %v1644_v28 = vpop.f32.mrb[7].mxu1 }
 0x2c2   : > { %1799 = vst.msk [vmem:[%s3222_s13 + $0x38] sm:$0xff] %vm1791_vm3, %v1766_v12  ;;  %v1765_v17 = vsel %vm1700_vm15, %v1565_v51, %v1733_v53  ;;  %v1645_v18 = vadd.f32 %v3207_v4, %v1644_v28 }
 0x2c3   : > { %1798 = vst.msk [vmem:[%s3222_s13 + $0x30] sm:$0xff] %vm1791_vm3, %v1765_v17  ;;  %vm1717_vm1 = vcmp.ge.f32.partialorder %v1650_v27, 0.0  ;;  %v1750_v54 = vmul.f32 %v3213_v9, %v1650_v27 }
 0x2c4   : > { %vm1716_vm2 = vcmp.ge.f32.partialorder %v1645_v18, 0.0  ;;  %v1749_v55 = vmul.f32 %v3213_v9, %v1645_v18 }
 0x2c5   : > { %v1782_v8 = vsel %vm1717_vm1, %v1650_v27, %v1750_v54 }
 0x2c6   : > { %1815 = vst.msk [vmem:[%s3222_s13 + $0xb8] sm:$0xff] %vm1791_vm3, %v1782_v8  ;;  %v1781_v56 = vsel %vm1716_vm2, %v1645_v18, %v1749_v55 }
 0x2c7   : > { %1814 = vst.msk [vmem:[%s3222_s13 + $0xb0] sm:$0xff] %vm1791_vm3, %v1781_v56 }
 0x2e4   : > { %v2009_v7 = vpop.f32.mrb[8].mxu0 }
 0x2e5   : > { %v1580_v24 = vadd.f32 %v2009_v7, %v3207_v4  ;;  %v1574_v23 = vpop.f32.mrb[9].mxu0 }
 0x2e6   : > { %v1575_v57 = vadd.f32 %v3207_v4, %v1574_v23 }
 0x2e7   : > { %vm1703_vm4 = vcmp.ge.f32.partialorder %v1580_v24, 0.0  ;;  %v1736_v58 = vmul.f32 %v3213_v9, %v1580_v24 }
 0x2e8   : > { %vm1702_vm5 = vcmp.ge.f32.partialorder %v1575_v57, 0.0  ;;  %v1735_v59 = vmul.f32 %v3213_v9, %v1575_v57  ;;  %v2033_v1 = vpop.f32.mrb[8].mxu1 }
 0x2e9   : > { %v1768_v60 = vsel %vm1703_vm4, %v1580_v24, %v1736_v58  ;;  %v1660_v3 = vadd.f32 %v2033_v1, %v3207_v4  ;;  %v1654_v20 = vpop.f32.mrb[9].mxu1 }
 0x2ea   : > { %1801 = vst.msk [vmem:[%s3222_s13 + $0x48] sm:$0xff] %vm1791_vm3, %v1768_v60  ;;  %v1767_v19 = vsel %vm1702_vm5, %v1575_v57, %v1735_v59  ;;  %v1655_v61 = vadd.f32 %v3207_v4, %v1654_v20 }
 0x2eb   : > { %1800 = vst.msk [vmem:[%s3222_s13 + $0x40] sm:$0xff] %vm1791_vm3, %v1767_v19  ;;  %vm1719_vm6 = vcmp.ge.f32.partialorder %v1660_v3, 0.0  ;;  %v1752_v62 = vmul.f32 %v3213_v9, %v1660_v3 }
 0x2ec   : > { %vm1718_vm7 = vcmp.ge.f32.partialorder %v1655_v61, 0.0  ;;  %v1751_v63 = vmul.f32 %v3213_v9, %v1655_v61 }
 0x2ed   : > { %v1784_v0 = vsel %vm1719_vm6, %v1660_v3, %v1752_v62 }
 0x2ee   : > { %1817 = vst.msk [vmem:[%s3222_s13 + $0xc8] sm:$0xff] %vm1791_vm3, %v1784_v0  ;;  %v1783_v31 = vsel %vm1718_vm7, %v1655_v61, %v1751_v63 }
 0x2ef   : > { %1816 = vst.msk [vmem:[%s3222_s13 + $0xc0] sm:$0xff] %vm1791_vm3, %v1783_v31 }
 0x310   : > { %v2012_v32 = vpop.f32.mrb[10].mxu0 }
 0x311   : > { %v1590_v33 = vadd.f32 %v2012_v32, %v3207_v4  ;;  %v1584_v13 = vpop.f32.mrb[11].mxu0 }
 0x312   : > { %v1585_v14 = vadd.f32 %v3207_v4, %v1584_v13 }
 0x313   : > { %vm1705_vm8 = vcmp.ge.f32.partialorder %v1590_v33, 0.0  ;;  %v1738_v29 = vmul.f32 %v3213_v9, %v1590_v33 }
 0x314   : > { %vm1704_vm9 = vcmp.ge.f32.partialorder %v1585_v14, 0.0  ;;  %v1737_v34 = vmul.f32 %v3213_v9, %v1585_v14  ;;  %v2036_v30 = vpop.f32.mrb[10].mxu1 }
 0x315   : > { %v1770_v2 = vsel %vm1705_vm8, %v1590_v33, %v1738_v29  ;;  %v1670_v10 = vadd.f32 %v2036_v30, %v3207_v4  ;;  %v1664_v35 = vpop.f32.mrb[11].mxu1 }
 0x316   : > { %1803 = vst.msk [vmem:[%s3222_s13 + $0x58] sm:$0xff] %vm1791_vm3, %v1770_v2  ;;  %v1769_v36 = vsel %vm1704_vm9, %v1585_v14, %v1737_v34  ;;  %v1665_v26 = vadd.f32 %v3207_v4, %v1664_v35 }
 0x317   : > { %1802 = vst.msk [vmem:[%s3222_s13 + $0x50] sm:$0xff] %vm1791_vm3, %v1769_v36  ;;  %vm1721_vm12 = vcmp.ge.f32.partialorder %v1670_v10, 0.0  ;;  %v1754_v25 = vmul.f32 %v3213_v9, %v1670_v10 }
 0x318   : > { %vm1720_vm10 = vcmp.ge.f32.partialorder %v1665_v26, 0.0  ;;  %v1753_v37 = vmul.f32 %v3213_v9, %v1665_v26 }
 0x319   : > { %v1786_v38 = vsel %vm1721_vm12, %v1670_v10, %v1754_v25 }
 0x31a   : > { %1819 = vst.msk [vmem:[%s3222_s13 + $0xd8] sm:$0xff] %vm1791_vm3, %v1786_v38  ;;  %v1785_v39 = vsel %vm1720_vm10, %v1665_v26, %v1753_v37 }
 0x31b   : > { %1818 = vst.msk [vmem:[%s3222_s13 + $0xd0] sm:$0xff] %vm1791_vm3, %v1785_v39 }
 0x334   : > { %v2015_v6 = vpop.f32.mrb[12].mxu0 }
 0x335   : > { %v1600_v40 = vadd.f32 %v2015_v6, %v3207_v4  ;;  %v1594_v5 = vpop.f32.mrb[13].mxu0 }
 0x336   : > { %v1595_v22 = vadd.f32 %v3207_v4, %v1594_v5 }
 0x337   : > { %vm1707_vm11 = vcmp.ge.f32.partialorder %v1600_v40, 0.0  ;;  %v1740_v21 = vmul.f32 %v3213_v9, %v1600_v40 }
 0x338   : > { %vm1706_vm0 = vcmp.ge.f32.partialorder %v1595_v22, 0.0  ;;  %v1739_v41 = vmul.f32 %v3213_v9, %v1595_v22  ;;  %v2039_v42 = vpop.f32.mrb[12].mxu1 }
 0x339   : > { %v1772_v43 = vsel %vm1707_vm11, %v1600_v40, %v1740_v21  ;;  %v1680_v15 = vadd.f32 %v2039_v42, %v3207_v4  ;;  %v1674_v16 = vpop.f32.mrb[13].mxu1 }
 0x33a   : > { %1805 = vst.msk [vmem:[%s3222_s13 + $0x68] sm:$0xff] %vm1791_vm3, %v1772_v43  ;;  %v1771_v44 = vsel %vm1706_vm0, %v1595_v22, %v1739_v41  ;;  %v1675_v45 = vadd.f32 %v3207_v4, %v1674_v16 }
 0x33b   : > { %1804 = vst.msk [vmem:[%s3222_s13 + $0x60] sm:$0xff] %vm1791_vm3, %v1771_v44  ;;  %vm1723_vm13 = vcmp.ge.f32.partialorder %v1680_v15, 0.0  ;;  %v1756_v46 = vmul.f32 %v3213_v9, %v1680_v15 }
 0x33c   : > { %vm1722_vm14 = vcmp.ge.f32.partialorder %v1675_v45, 0.0  ;;  %v1755_v47 = vmul.f32 %v3213_v9, %v1675_v45 }
 0x33d   : > { %v1788_v48 = vsel %vm1723_vm13, %v1680_v15, %v1756_v46 }
 0x33e   : > { %1821 = vst.msk [vmem:[%s3222_s13 + $0xe8] sm:$0xff] %vm1791_vm3, %v1788_v48  ;;  %v1787_v49 = vsel %vm1722_vm14, %v1675_v45, %v1755_v47 }
 0x33f   : > { %1820 = vst.msk [vmem:[%s3222_s13 + $0xe0] sm:$0xff] %vm1791_vm3, %v1787_v49 }
 0x351   : > { %v2042_v50 = vpop.f32.mrb[14].mxu1 }
 0x352   : > { %v1690_v51 = vadd.f32 %v2042_v50, %v3207_v4  ;;  %v1684_v52 = vpop.f32.mrb[15].mxu1 }
 0x353   : > { %v1685_v53 = vadd.f32 %v3207_v4, %v1684_v52 }
 0x354   : > { %vm1725_vm15 = vcmp.ge.f32.partialorder %v1690_v51, 0.0  ;;  %v1758_v11 = vmul.f32 %v3213_v9, %v1690_v51 }
 0x355   : > { %vm1724_vm1 = vcmp.ge.f32.partialorder %v1685_v53, 0.0  ;;  %v1757_v12 = vmul.f32 %v3213_v9, %v1685_v53  ;;  %v2018_v27 = vpop.f32.mrb[14].mxu0 }
 0x356   : > { %v1790_v28 = vsel %vm1725_vm15, %v1690_v51, %v1758_v11  ;;  %v1610_v17 = vadd.f32 %v2018_v27, %v3207_v4  ;;  %v1604_v18 = vpop.f32.mrb[15].mxu0 }
 0x357   : > { %1823 = vst.msk [vmem:[%s3222_s13 + $0xf8] sm:$0xff] %vm1791_vm3, %v1790_v28  ;;  %v1789_v54 = vsel %vm1724_vm1, %v1685_v53, %v1757_v12  ;;  %v1605_v55 = vadd.f32 %v3207_v4, %v1604_v18 }
 0x358   : > { %1822 = vst.msk [vmem:[%s3222_s13 + $0xf0] sm:$0xff] %vm1791_vm3, %v1789_v54  ;;  %vm1709_vm2 = vcmp.ge.f32.partialorder %v1610_v17, 0.0  ;;  %v1742_v8 = vmul.f32 %v3213_v9, %v1610_v17 }
 0x359   : > { %vm1708_vm4 = vcmp.ge.f32.partialorder %v1605_v55, 0.0  ;;  %v1741_v56 = vmul.f32 %v3213_v9, %v1605_v55 }
 0x35a   : > { %v1774_v7 = vsel %vm1709_vm2, %v1610_v17, %v1742_v8 }
 0x35b   : > { %1807 = vst.msk [vmem:[%s3222_s13 + $0x78] sm:$0xff] %vm1791_vm3, %v1774_v7  ;;  %v1773_v4 = vsel %vm1708_vm4, %v1605_v55, %v1741_v56 }
 0x35c   : > { %1806 = vst.msk [vmem:[%s3222_s13 + $0x70] sm:$0xff] %vm1791_vm3, %v1773_v4 }
 0x35d   : > { %2119 = shalt.err (!%p2116_p3)
}
 0x35e   : > { %s2120_s5 = scalar_lea.hbm %s3380_s3, 4096  ;;  %s2124_s9 = scalar_lea.hbm %s3436_s4, 8192 }
 0x35f   : > { %p2121_p4 = scmp.ne.s32.totalorder %s3380_s3, %s2120_s5  ;;  %p2125_p9 = scmp.lt.u32.totalorder %s3380_s3, %s3436_s4 }
 0x360   : > { %p2126_p10 = scmp.lt.u32.totalorder %s2124_s9, %s2120_s5  ;;  %p2128_p12 = scmp.lt.u32.totalorder %s2120_s5, %s3380_s3 }
 0x361   : > { %p2122_p7 = pnand %p2121_p4, %p2247_p5 }
 0x362   : > { %p2127_p11 = por %p2126_p10, %p2125_p9 }
 0x363   : > { %p2123_p8 = pneg %p2122_p7 }
 0x364   : > { %p2129_p13 = por %p2128_p12, %p2127_p11 }
 0x366   : > { %p2130_p0 = pnand %p2129_p13, %p2123_p8 }
 0x368   : > { %2133 = shalt.err (!%p2130_p0)
}
 0x369   : > { %s2180_s12 = smov 128  }
 0x36a   : > { %2057 = dma.vmem_to_hbm [thread:$0]  (%p2247_p5), %s3382_s15, 4096, %s3380_s3, %s3390_s23, %s2180_s12, %s2180_s12, %s2172_s8  }
 0x36b PF: > { %p2063_p1 = scmp.ge.s32.totalorder %s2168_s20, 2  ;;  %s1853_s13 = sand.u32 1, %s2156_s17  }
 0x36c   : > { %s1854_s14 = scalar_lea.sflag [#allocation5], %s1853_s13 }
 0x36d   : > { %p2060_p2 = pnand %p2063_p1, %p2251_p6 }
 0x36f   : > { %2151 = dma.done.wait (!%p2060_p2), %s1854_s14, 4096  }
 0x370   : > { %2153 = vsyncadd (!%p2060_p2), %s1854_s14, 4294963200  ;;  %p15_p3 = scmp.ge.s32.totalorder %s2234_s22, 4   ;;  %s3439_s17 = smov %s2160_s18 }
 0x371   : > { %s3440_s18 = smov %s2164_s19  ;;  %s3441_s19 = smov %s2245_s25 }
 0x372   : > { %s3442_s20 = smov %s2234_s22  ;;  %17 = sbr.rel (!%p15_p3) target bundleno = 5 (0x5), region = 72 }
 0x379   :  { %1859 = vsyncpa [#allocation5], 1 }
 0x37a   :  { %1861 = vsyncpa [#allocation5 + $0x1], 1 }

</bundles_post_ra>
